<compile_context>
chip_gen: v7x
topology: tpu7x:2x2x1
jax: 0.10.0
libtpu: 0.0.40
codegen_flags: <defaults>
</compile_context>

<pallas_src>
import functools

import jax
import jax.numpy as jnp
from jax.experimental import pallas as pl
from jax.experimental.pallas import tpu as pltpu

WIN = 21
PAD = WIN // 2
WIN_SIZE = float(WIN * WIN)
EPS = 1e-5


def _reg_loss_kernel(bh_ref, bw_ref, mov_ref, fix_ref, df_ref, dfg_ref,
                     sim_ref, jdet_ref, v_ref, *, nb, H, W):
    f32 = jnp.float32
    bf16 = jnp.bfloat16

    bh = bh_ref[...]                  # (H, H) bf16 band, resident across steps
    bw = bw_ref[...]                  # (W, W) bf16 band, resident across steps

    # f32 operand split into hi/lo bf16 parts -> two exact bf16 MXU passes give
    # ~f32-accurate results (band matrix entries are 0/1, exact in bf16).
    def split_hi_lo(a):
        hi = a.astype(bf16)
        lo = (a - hi.astype(f32)).astype(bf16)
        return hi, lo

    # ------------------ local NCC (win=21, zero "same" padding) --------------
    # Batched over the 5 quantities and the nb samples of this grid step.
    I = mov_ref[...]                  # (nb, H, W)
    J = fix_ref[...]                  # (nb, H, W)
    quantities = (I, J, I * I, J * J, I * J)

    # Right band pass: one (5*nb*H, W) @ (W, W) hi/lo matmul pair.
    X = jnp.concatenate([q[s] for q in quantities for s in range(nb)], axis=0)
    xh, xl = split_hi_lo(X)
    Z = (jnp.dot(xh, bw, preferred_element_type=f32)
         + jnp.dot(xl, bw, preferred_element_type=f32))        # (5*nb*H, W)

    # Left band pass: lane-concat the 5*nb row blocks -> (H, 5*nb*W), then one
    # (H, H) @ (H, 5*nb*W) hi/lo matmul pair.
    Zl = jnp.concatenate([Z[k * H:(k + 1) * H, :] for k in range(5 * nb)],
                         axis=1)
    zh, zl = split_hi_lo(Zl)
    Y = (jnp.dot(bh, zh, preferred_element_type=f32)
         + jnp.dot(bh, zl, preferred_element_type=f32))         # (H, 5*nb*W)

    nw = nb * W                      # each quantity slab is (H, nb*W)
    I_sum = Y[:, 0 * nw:1 * nw]
    J_sum = Y[:, 1 * nw:2 * nw]
    I2_sum = Y[:, 2 * nw:3 * nw]
    J2_sum = Y[:, 3 * nw:4 * nw]
    IJ_sum = Y[:, 4 * nw:5 * nw]

    u_I = I_sum * (1.0 / WIN_SIZE)
    u_J = J_sum * (1.0 / WIN_SIZE)
    cross = IJ_sum - u_J * I_sum - u_I * J_sum + u_I * u_J * WIN_SIZE
    I_var = I2_sum - 2.0 * u_I * I_sum + u_I * u_I * WIN_SIZE
    J_var = J2_sum - 2.0 * u_J * J_sum + u_J * u_J * WIN_SIZE
    cc = (cross * cross) * pl.reciprocal(I_var * J_var + EPS, approx=False)

    # --------- negative Jacobian-determinant penalty (normalized coords) -----
    sx = (W - 1) / 2.0               # [-1,1] coord -> pixel rescale
    sy = (H - 1) / 2.0
    phi = dfg_ref[...]               # (nb, 2, H, W)
    p00 = phi[:, :, :H - 1, :W - 1]
    dpdx = (phi[:, :, :H - 1, 1:] - p00) * sx
    dpdy = (phi[:, :, 1:, :W - 1] - p00) * sy
    jdet = dpdx[:, 0] * dpdy[:, 1] - dpdx[:, 1] * dpdy[:, 0]    # (nb, H-1, W-1)
    neg = jnp.maximum(-jdet, 0.0)    # relu(margin - Jdet), margin = 0

    # ------------------- displacement magnitude penalty ----------------------
    d = df_ref[...]                  # (nb, 2, H, W)
    vterm = 10.0 * jnp.abs(d) + d * d
    v2 = vterm[:, 0] + vterm[:, 1]   # (nb, H, W)

    # Per-sample partial sums; the loop only does reductions and (1,1) stores,
    # so it keeps no large temporaries live across iterations.
    for i in range(nb):
        sim_ref[i] = jnp.sum(cc[:, i * W:(i + 1) * W], keepdims=True)
        jdet_ref[i] = jnp.sum(neg[i], keepdims=True)
        v_ref[i] = jnp.sum(v2[i], keepdims=True)


def _band(n):
    idx = jnp.arange(n)
    d = idx[:, None] - idx[None, :]
    return ((d <= PAD) & (d >= -PAD)).astype(jnp.bfloat16)   # exact 0/1 in bf16


def _vmem_ceiling_bytes():
    """Generation-aware VMEM request ceiling (conservative if query fails)."""
    try:
        info = pltpu.get_tpu_info()
        cap = int(getattr(info, "vmem_capacity_bytes", 0))
    except Exception:
        cap = 0
    if cap == 0:
        return 48 * 2 ** 20                 # unknown: safe on every generation
    if cap <= 64 * 2 ** 20:
        return 48 * 2 ** 20                 # v7x: 64 MiB / TensorCore
    return 100 * 2 ** 20                    # v5e / v6e: 128 MiB


def reg_loss(moving_warped, fixed, df, df_with_grid, *, nb=None):
    N, C, H, W = moving_warped.shape
    assert C == 1, "local NCC expects single-channel images"
    assert df.shape == (N, 2, H, W) and df_with_grid.shape == (N, 2, H, W)
    f32 = jnp.float32

    ceiling = _vmem_ceiling_bytes()

    # Per-step VMEM estimate; the temporaries term scales with nb because the
    # NCC/Jdet/v-term intermediates are batched over all nb samples of a step.
    def est_vmem(nb_):
        inputs = 2 * nb_ * 6 * H * W * 4            # double-buffered input blocks
        bands = 2 * 2 * (H * H + W * W)             # resident bf16 band matrices
        tmps = nb_ * 60 * H * W * 4                 # X/Z/Y, hi/lo, NCC & Jdet temps
        return inputs + bands + tmps + (2 << 20)

    # Pick samples-per-step: prefer >=2 (and even) grid steps so the "parallel"
    # batch axis can use both v7x TensorCores, then the largest nb that fits.
    if nb is None:
        cands = [c for c in range(1, min(N, 8) + 1)
                 if N % c == 0 and est_vmem(c) <= ceiling]
        if not cands:
            cands = [1]

        def key(c):
            steps_c = N // c
            return (steps_c >= 2, steps_c % 2 == 0, c)

        nb = max(cands, key=key)
    assert N % nb == 0
    steps = N // nb

    vmem_limit = int(min(ceiling, max(32 * 2 ** 20, est_vmem(nb))))

    bh = _band(H)                                   # (H, H) bf16
    bw = _band(W)                                   # (W, W) bf16

    kernel = functools.partial(_reg_loss_kernel, nb=nb, H=H, W=W)

    sim_p, jdet_p, v_p = pl.pallas_call(
        kernel,
        out_shape=(
            jax.ShapeDtypeStruct((N, 1, 1), f32),   # per-sample sum of cc
            jax.ShapeDtypeStruct((N, 1, 1), f32),   # per-sample sum of relu(-Jdet)
            jax.ShapeDtypeStruct((N, 1, 1), f32),   # per-sample sum of 10|df| + df^2
        ),
        grid_spec=pltpu.PrefetchScalarGridSpec(
            num_scalar_prefetch=0,
            grid=(steps,),
            in_specs=[
                pl.BlockSpec((H, H), lambda b: (0, 0)),      # bh: resident
                pl.BlockSpec((W, W), lambda b: (0, 0)),      # bw: resident
                pl.BlockSpec((nb, H, W), lambda b: (b, 0, 0)),
                pl.BlockSpec((nb, H, W), lambda b: (b, 0, 0)),
                pl.BlockSpec((nb, 2, H, W), lambda b: (b, 0, 0, 0)),
                pl.BlockSpec((nb, 2, H, W), lambda b: (b, 0, 0, 0)),
            ],
            out_specs=[
                pl.BlockSpec((nb, 1, 1), lambda b: (b, 0, 0)),
                pl.BlockSpec((nb, 1, 1), lambda b: (b, 0, 0)),
                pl.BlockSpec((nb, 1, 1), lambda b: (b, 0, 0)),
            ],
        ),
        compiler_params=pltpu.CompilerParams(
            dimension_semantics=("parallel",),      # independent per-batch blocks
            vmem_limit_bytes=vmem_limit),
    )(bh, bw,
      moving_warped.astype(f32)[:, 0], fixed.astype(f32)[:, 0],
      df.astype(f32), df_with_grid.astype(f32))

    sim_loss = -(jnp.sum(sim_p) / (N * H * W))
    jdet_scalar = jnp.sum(jdet_p) / (N * (H - 1) * (W - 1))
    jdet_loss = 10.0 * jdet_scalar + jdet_scalar ** 2   # .mean() of a scalar
    v_loss = jnp.sum(v_p) / (N * 2 * H * W)
    total = sim_loss + 0.01 * jdet_loss + 0.001 * v_loss
    return sim_loss, jdet_loss, v_loss, total


# ------------------------- pure-JAX reference (for check) ----------------------
def _ref_reg_loss(moving_warped, fixed, df, df_with_grid):
    f32 = jnp.float32
    N, _, H, W = moving_warped.shape
    I = moving_warped[:, 0].astype(f32)
    J = fixed[:, 0].astype(f32)

    def boxsum(x):
        xp = jnp.pad(x, ((0, 0), (PAD, PAD), (PAD, PAD)))
        h = sum(xp[:, :, k:k + W] for k in range(WIN))
        return sum(h[:, k:k + H, :] for k in range(WIN))

    I_sum, J_sum = boxsum(I), boxsum(J)
    I2_sum, J2_sum, IJ_sum = boxsum(I * I), boxsum(J * J), boxsum(I * J)
    u_I, u_J = I_sum / WIN_SIZE, J_sum / WIN_SIZE
    cross = IJ_sum - u_J * I_sum - u_I * J_sum + u_I * u_J * WIN_SIZE
    I_var = I2_sum - 2 * u_I * I_sum + u_I * u_I * WIN_SIZE
    J_var = J2_sum - 2 * u_J * J_sum + u_J * u_J * WIN_SIZE
    cc = cross * cross / (I_var * J_var + EPS)
    sim_loss = -jnp.mean(cc)

    phi = df_with_grid.astype(f32)
    sx, sy = (W - 1) / 2.0, (H - 1) / 2.0
    p00 = phi[:, :, :H - 1, :W - 1]
    dpdx = (phi[:, :, :H - 1, 1:] - p00) * sx
    dpdy = (phi[:, :, 1:, :W - 1] - p00) * sy
    jdet = dpdx[:, 0] * dpdy[:, 1] - dpdx[:, 1] * dpdy[:, 0]
    jdet_scalar = jnp.mean(jnp.maximum(-jdet, 0.0))
    jdet_loss = 10.0 * jdet_scalar + jdet_scalar ** 2

    d = df.astype(f32)
    v_loss = jnp.mean(10.0 * jnp.abs(d) + d * d)
    total = sim_loss + 0.01 * jdet_loss + 0.001 * v_loss
    return sim_loss, jdet_loss, v_loss, total


if __name__ == "__main__":
    N, H, W = 2, 32, 32
    key = jax.random.PRNGKey(0)
    k1, k2, k3 = jax.random.split(key, 3)

    moving_warped = jax.random.uniform(k1, (N, 1, H, W), jnp.float32)
    fixed = jax.random.uniform(k2, (N, 1, H, W), jnp.float32)
    df = 0.5 * jax.random.normal(k3, (N, 2, H, W), jnp.float32)   # pixel-space field

    ys = jnp.linspace(-1.0, 1.0, H)
    xs = jnp.linspace(-1.0, 1.0, W)
    gy, gx = jnp.meshgrid(ys, xs, indexing="ij")
    grid = jnp.stack([gx, gy], axis=0)[None]                      # (1, 2, H, W)
    df_with_grid = grid + df * (2.0 / (W - 1))                    # normalized coords

    out = reg_loss(moving_warped, fixed, df, df_with_grid)
    out = jax.block_until_ready(out)

    ref = _ref_reg_loss(moving_warped, fixed, df, df_with_grid)
    for a, b in zip(out, ref):
        assert jnp.allclose(a, b, rtol=1e-3, atol=1e-4), (a, b)

    print("KERNEL_OK")
</pallas_src>

<mosaic_0001>
module attributes {stable_mosaic.version = 11 : i64} {
  func.func @_reg_loss_kernel(%arg0: i32, %arg1: memref<32x32xbf16, #tpu.memory_space<vmem>>, %arg2: memref<32x32xbf16, #tpu.memory_space<vmem>>, %arg3: memref<1x32x32xf32, #tpu.memory_space<vmem>>, %arg4: memref<1x32x32xf32, #tpu.memory_space<vmem>>, %arg5: memref<1x2x32x32xf32, #tpu.memory_space<vmem>>, %arg6: memref<1x2x32x32xf32, #tpu.memory_space<vmem>>, %arg7: memref<1x1x1xf32, #tpu.memory_space<vmem>>, %arg8: memref<1x1x1xf32, #tpu.memory_space<vmem>>, %arg9: memref<1x1x1xf32, #tpu.memory_space<vmem>>) attributes {dimension_semantics = [#tpu.dimension_semantics<parallel>], iteration_bounds = array<i64: 2>, scalar_prefetch = 0 : i64, scratch_operands = 0 : i64, tpu.core_type = #tpu.core_type<tc>, window_params = [{pipeline_mode = #tpu.pipeline_mode<synchronous>, transform_indices = @transform_0, window_bounds = array<i64: 32, 32>}, {pipeline_mode = #tpu.pipeline_mode<synchronous>, transform_indices = @transform_1, window_bounds = array<i64: 32, 32>}, {transform_indices = @transform_2, window_bounds = array<i64: 1, 32, 32>}, {transform_indices = @transform_3, window_bounds = array<i64: 1, 32, 32>}, {transform_indices = @transform_4, window_bounds = array<i64: 1, 2, 32, 32>}, {transform_indices = @transform_5, window_bounds = array<i64: 1, 2, 32, 32>}, {transform_indices = @transform_6, window_bounds = array<i64: 1, 1, 1>}, {transform_indices = @transform_7, window_bounds = array<i64: 1, 1, 1>}, {transform_indices = @transform_8, window_bounds = array<i64: 1, 1, 1>}]} {
    %c0 = arith.constant 0 : index
    %c0_0 = arith.constant 0 : index
    %0 = vector.load %arg1[%c0, %c0_0] : memref<32x32xbf16, #tpu.memory_space<vmem>>, vector<32x32xbf16>
    %c0_1 = arith.constant 0 : index
    %c0_2 = arith.constant 0 : index
    %1 = vector.load %arg2[%c0_1, %c0_2] : memref<32x32xbf16, #tpu.memory_space<vmem>>, vector<32x32xbf16>
    %c0_3 = arith.constant 0 : index
    %c0_4 = arith.constant 0 : index
    %c0_5 = arith.constant 0 : index
    %2 = vector.load %arg3[%c0_3, %c0_4, %c0_5] : memref<1x32x32xf32, #tpu.memory_space<vmem>>, vector<1x32x32xf32>
    %c0_6 = arith.constant 0 : index
    %c0_7 = arith.constant 0 : index
    %c0_8 = arith.constant 0 : index
    %3 = vector.load %arg4[%c0_6, %c0_7, %c0_8] : memref<1x32x32xf32, #tpu.memory_space<vmem>>, vector<1x32x32xf32>
    %4 = arith.mulf %2, %2 : vector<1x32x32xf32>
    %5 = arith.mulf %3, %3 : vector<1x32x32xf32>
    %6 = arith.mulf %2, %3 : vector<1x32x32xf32>
    %7 = vector.shape_cast %2 : vector<1x32x32xf32> to vector<32x32xf32>
    %8 = vector.shape_cast %3 : vector<1x32x32xf32> to vector<32x32xf32>
    %9 = vector.shape_cast %4 : vector<1x32x32xf32> to vector<32x32xf32>
    %10 = vector.shape_cast %5 : vector<1x32x32xf32> to vector<32x32xf32>
    %11 = vector.shape_cast %6 : vector<1x32x32xf32> to vector<32x32xf32>
    %12 = tpu.concatenate %7, %8, %9, %10, %11 in 0 : vector<32x32xf32>, vector<32x32xf32>, vector<32x32xf32>, vector<32x32xf32>, vector<32x32xf32> -> vector<160x32xf32>
    %13 = arith.truncf %12 : vector<160x32xf32> to vector<160x32xbf16>
    %14 = arith.extf %13 : vector<160x32xbf16> to vector<160x32xf32>
    %15 = arith.subf %12, %14 : vector<160x32xf32>
    %16 = arith.truncf %15 : vector<160x32xf32> to vector<160x32xbf16>
    %cst = arith.constant dense<0.000000e+00> : vector<160x32xf32>
    %17 = tpu.matmul %13, %1, %cst {dimension_numbers = #tpu.dot_dimension_numbers<[1], [0], [0], [1], [0, 0, 1, 1], [], []>} : vector<160x32xbf16>, vector<32x32xbf16>, vector<160x32xf32> -> vector<160x32xf32>
    %cst_9 = arith.constant dense<0.000000e+00> : vector<160x32xf32>
    %18 = tpu.matmul %16, %1, %cst_9 {dimension_numbers = #tpu.dot_dimension_numbers<[1], [0], [0], [1], [0, 0, 1, 1], [], []>} : vector<160x32xbf16>, vector<32x32xbf16>, vector<160x32xf32> -> vector<160x32xf32>
    %19 = arith.addf %17, %18 : vector<160x32xf32>
    %20 = vector.extract_strided_slice %19 {offsets = [0, 0], sizes = [32, 32], strides = [1, 1]} : vector<160x32xf32> to vector<32x32xf32>
    %21 = vector.extract_strided_slice %19 {offsets = [32, 0], sizes = [32, 32], strides = [1, 1]} : vector<160x32xf32> to vector<32x32xf32>
    %22 = vector.extract_strided_slice %19 {offsets = [64, 0], sizes = [32, 32], strides = [1, 1]} : vector<160x32xf32> to vector<32x32xf32>
    %23 = vector.extract_strided_slice %19 {offsets = [96, 0], sizes = [32, 32], strides = [1, 1]} : vector<160x32xf32> to vector<32x32xf32>
    %24 = vector.extract_strided_slice %19 {offsets = [128, 0], sizes = [32, 32], strides = [1, 1]} : vector<160x32xf32> to vector<32x32xf32>
    %25 = tpu.concatenate %20, %21, %22, %23, %24 in 1 : vector<32x32xf32>, vector<32x32xf32>, vector<32x32xf32>, vector<32x32xf32>, vector<32x32xf32> -> vector<32x160xf32>
    %26 = arith.truncf %25 : vector<32x160xf32> to vector<32x160xbf16>
    %27 = arith.extf %26 : vector<32x160xbf16> to vector<32x160xf32>
    %28 = arith.subf %25, %27 : vector<32x160xf32>
    %29 = arith.truncf %28 : vector<32x160xf32> to vector<32x160xbf16>
    %cst_10 = arith.constant dense<0.000000e+00> : vector<32x160xf32>
    %30 = tpu.matmul %0, %26, %cst_10 {dimension_numbers = #tpu.dot_dimension_numbers<[1], [0], [0], [1], [0, 0, 1, 1], [], []>} : vector<32x32xbf16>, vector<32x160xbf16>, vector<32x160xf32> -> vector<32x160xf32>
    %cst_11 = arith.constant dense<0.000000e+00> : vector<32x160xf32>
    %31 = tpu.matmul %0, %29, %cst_11 {dimension_numbers = #tpu.dot_dimension_numbers<[1], [0], [0], [1], [0, 0, 1, 1], [], []>} : vector<32x32xbf16>, vector<32x160xbf16>, vector<32x160xf32> -> vector<32x160xf32>
    %32 = arith.addf %30, %31 : vector<32x160xf32>
    %33 = vector.extract_strided_slice %32 {offsets = [0, 0], sizes = [32, 32], strides = [1, 1]} : vector<32x160xf32> to vector<32x32xf32>
    %34 = vector.extract_strided_slice %32 {offsets = [0, 32], sizes = [32, 32], strides = [1, 1]} : vector<32x160xf32> to vector<32x32xf32>
    %35 = vector.extract_strided_slice %32 {offsets = [0, 64], sizes = [32, 32], strides = [1, 1]} : vector<32x160xf32> to vector<32x32xf32>
    %36 = vector.extract_strided_slice %32 {offsets = [0, 96], sizes = [32, 32], strides = [1, 1]} : vector<32x160xf32> to vector<32x32xf32>
    %37 = vector.extract_strided_slice %32 {offsets = [0, 128], sizes = [32, 32], strides = [1, 1]} : vector<32x160xf32> to vector<32x32xf32>
    %cst_12 = arith.constant 0.00226757373 : f32
    %38 = vector.broadcast %cst_12 : f32 to vector<32x32xf32>
    %39 = arith.mulf %33, %38 : vector<32x32xf32>
    %cst_13 = arith.constant 0.00226757373 : f32
    %40 = vector.broadcast %cst_13 : f32 to vector<32x32xf32>
    %41 = arith.mulf %34, %40 : vector<32x32xf32>
    %42 = arith.mulf %41, %33 : vector<32x32xf32>
    %43 = arith.subf %37, %42 : vector<32x32xf32>
    %44 = arith.mulf %39, %34 : vector<32x32xf32>
    %45 = arith.subf %43, %44 : vector<32x32xf32>
    %46 = arith.mulf %39, %41 : vector<32x32xf32>
    %cst_14 = arith.constant 4.410000e+02 : f32
    %47 = vector.broadcast %cst_14 : f32 to vector<32x32xf32>
    %48 = arith.mulf %46, %47 : vector<32x32xf32>
    %49 = arith.addf %45, %48 : vector<32x32xf32>
    %cst_15 = arith.constant 2.000000e+00 : f32
    %50 = vector.broadcast %cst_15 : f32 to vector<32x32xf32>
    %51 = arith.mulf %50, %39 : vector<32x32xf32>
    %52 = arith.mulf %51, %33 : vector<32x32xf32>
    %53 = arith.subf %35, %52 : vector<32x32xf32>
    %54 = arith.mulf %39, %39 : vector<32x32xf32>
    %cst_16 = arith.constant 4.410000e+02 : f32
    %55 = vector.broadcast %cst_16 : f32 to vector<32x32xf32>
    %56 = arith.mulf %54, %55 : vector<32x32xf32>
    %57 = arith.addf %53, %56 : vector<32x32xf32>
    %cst_17 = arith.constant 2.000000e+00 : f32
    %58 = vector.broadcast %cst_17 : f32 to vector<32x32xf32>
    %59 = arith.mulf %58, %41 : vector<32x32xf32>
    %60 = arith.mulf %59, %34 : vector<32x32xf32>
    %61 = arith.subf %36, %60 : vector<32x32xf32>
    %62 = arith.mulf %41, %41 : vector<32x32xf32>
    %cst_18 = arith.constant 4.410000e+02 : f32
    %63 = vector.broadcast %cst_18 : f32 to vector<32x32xf32>
    %64 = arith.mulf %62, %63 : vector<32x32xf32>
    %65 = arith.addf %61, %64 : vector<32x32xf32>
    %66 = arith.mulf %49, %49 : vector<32x32xf32>
    %67 = arith.mulf %57, %65 : vector<32x32xf32>
    %cst_19 = arith.constant 9.99999974E-6 : f32
    %68 = vector.broadcast %cst_19 : f32 to vector<32x32xf32>
    %69 = arith.addf %67, %68 : vector<32x32xf32>
    %70 = tpu.reciprocal %69 : vector<32x32xf32> -> vector<32x32xf32>
    %71 = arith.mulf %66, %70 : vector<32x32xf32>
    %c0_20 = arith.constant 0 : index
    %c0_21 = arith.constant 0 : index
    %c0_22 = arith.constant 0 : index
    %c0_23 = arith.constant 0 : index
    %72 = vector.load %arg6[%c0_20, %c0_21, %c0_22, %c0_23] : memref<1x2x32x32xf32, #tpu.memory_space<vmem>>, vector<1x2x32x32xf32>
    %73 = vector.extract_strided_slice %72 {offsets = [0, 0, 0, 0], sizes = [1, 2, 31, 31], strides = [1, 1, 1, 1]} : vector<1x2x32x32xf32> to vector<1x2x31x31xf32>
    %74 = vector.extract_strided_slice %72 {offsets = [0, 0, 0, 1], sizes = [1, 2, 31, 31], strides = [1, 1, 1, 1]} : vector<1x2x32x32xf32> to vector<1x2x31x31xf32>
    %75 = arith.subf %74, %73 : vector<1x2x31x31xf32>
    %cst_24 = arith.constant 1.550000e+01 : f32
    %76 = vector.broadcast %cst_24 : f32 to vector<1x2x31x31xf32>
    %77 = arith.mulf %75, %76 : vector<1x2x31x31xf32>
    %78 = vector.extract_strided_slice %72 {offsets = [0, 0, 1, 0], sizes = [1, 2, 31, 31], strides = [1, 1, 1, 1]} : vector<1x2x32x32xf32> to vector<1x2x31x31xf32>
    %79 = arith.subf %78, %73 : vector<1x2x31x31xf32>
    %cst_25 = arith.constant 1.550000e+01 : f32
    %80 = vector.broadcast %cst_25 : f32 to vector<1x2x31x31xf32>
    %81 = arith.mulf %79, %80 : vector<1x2x31x31xf32>
    %82 = vector.extract_strided_slice %77 {offsets = [0, 0, 0, 0], sizes = [1, 1, 31, 31], strides = [1, 1, 1, 1]} : vector<1x2x31x31xf32> to vector<1x1x31x31xf32>
    %83 = vector.shape_cast %82 : vector<1x1x31x31xf32> to vector<1x31x31xf32>
    %84 = vector.extract_strided_slice %81 {offsets = [0, 1, 0, 0], sizes = [1, 1, 31, 31], strides = [1, 1, 1, 1]} : vector<1x2x31x31xf32> to vector<1x1x31x31xf32>
    %85 = vector.shape_cast %84 : vector<1x1x31x31xf32> to vector<1x31x31xf32>
    %86 = arith.mulf %83, %85 : vector<1x31x31xf32>
    %87 = vector.extract_strided_slice %77 {offsets = [0, 1, 0, 0], sizes = [1, 1, 31, 31], strides = [1, 1, 1, 1]} : vector<1x2x31x31xf32> to vector<1x1x31x31xf32>
    %88 = vector.shape_cast %87 : vector<1x1x31x31xf32> to vector<1x31x31xf32>
    %89 = vector.extract_strided_slice %81 {offsets = [0, 0, 0, 0], sizes = [1, 1, 31, 31], strides = [1, 1, 1, 1]} : vector<1x2x31x31xf32> to vector<1x1x31x31xf32>
    %90 = vector.shape_cast %89 : vector<1x1x31x31xf32> to vector<1x31x31xf32>
    %91 = arith.mulf %88, %90 : vector<1x31x31xf32>
    %92 = arith.subf %86, %91 : vector<1x31x31xf32>
    %cst_26 = arith.constant 0.000000e+00 : f32
    %93 = vector.broadcast %cst_26 : f32 to vector<1x31x31xf32>
    %94 = arith.subf %93, %92 : vector<1x31x31xf32>
    %cst_27 = arith.constant 0.000000e+00 : f32
    %95 = vector.broadcast %cst_27 : f32 to vector<1x31x31xf32>
    %96 = arith.maximumf %94, %95 : vector<1x31x31xf32>
    %c0_28 = arith.constant 0 : index
    %c0_29 = arith.constant 0 : index
    %c0_30 = arith.constant 0 : index
    %c0_31 = arith.constant 0 : index
    %97 = vector.load %arg5[%c0_28, %c0_29, %c0_30, %c0_31] : memref<1x2x32x32xf32, #tpu.memory_space<vmem>>, vector<1x2x32x32xf32>
    %98 = math.absf %97 : vector<1x2x32x32xf32>
    %cst_32 = arith.constant 1.000000e+01 : f32
    %99 = vector.broadcast %cst_32 : f32 to vector<1x2x32x32xf32>
    %100 = arith.mulf %99, %98 : vector<1x2x32x32xf32>
    %101 = arith.mulf %97, %97 : vector<1x2x32x32xf32>
    %102 = arith.addf %100, %101 : vector<1x2x32x32xf32>
    %103 = vector.extract_strided_slice %102 {offsets = [0, 0, 0, 0], sizes = [1, 1, 32, 32], strides = [1, 1, 1, 1]} : vector<1x2x32x32xf32> to vector<1x1x32x32xf32>
    %104 = vector.shape_cast %103 : vector<1x1x32x32xf32> to vector<1x32x32xf32>
    %105 = vector.extract_strided_slice %102 {offsets = [0, 1, 0, 0], sizes = [1, 1, 32, 32], strides = [1, 1, 1, 1]} : vector<1x2x32x32xf32> to vector<1x1x32x32xf32>
    %106 = vector.shape_cast %105 : vector<1x1x32x32xf32> to vector<1x32x32xf32>
    %107 = arith.addf %104, %106 : vector<1x32x32xf32>
    %108 = vector.shape_cast %71 : vector<32x32xf32> to vector<1x32x32xf32>
    %cst_33 = arith.constant dense<0.000000e+00> : vector<1xf32>
    %109 = vector.multi_reduction <add>, %108, %cst_33 [1, 2] : vector<1x32x32xf32> to vector<1xf32>
    %110 = vector.shape_cast %109 : vector<1xf32> to vector<1x1x1xf32>
    %111 = vector.extract %110[0, 0, 0] : f32 from vector<1x1x1xf32>
    %112 = vector.broadcast %111 : f32 to vector<1x1xf32>
    %c0_34 = arith.constant 0 : index
    %c0_35 = arith.constant 0 : index
    %c0_36 = arith.constant 0 : index
    %113 = vector.load %arg7[%c0_34, %c0_35, %c0_36] : memref<1x1x1xf32, #tpu.memory_space<vmem>>, vector<1x1x1xf32>
    %114 = vector.shape_cast %113 : vector<1x1x1xf32> to vector<1x1xf32>
    %115 = vector.shape_cast %112 : vector<1x1xf32> to vector<1x1x1xf32>
    tpu.vector_store %arg7[%c0_34, %c0_35, %c0_36], %115 {strides = array<i32>} : memref<1x1x1xf32, #tpu.memory_space<vmem>>, vector<1x1x1xf32>,
    %116 = vector.shape_cast %96 : vector<1x31x31xf32> to vector<31x31xf32>
    %117 = vector.shape_cast %116 : vector<31x31xf32> to vector<1x31x31xf32>
    %cst_37 = arith.constant dense<0.000000e+00> : vector<1xf32>
    %118 = vector.multi_reduction <add>, %117, %cst_37 [1, 2] : vector<1x31x31xf32> to vector<1xf32>
    %119 = vector.shape_cast %118 : vector<1xf32> to vector<1x1x1xf32>
    %120 = vector.extract %119[0, 0, 0] : f32 from vector<1x1x1xf32>
    %121 = vector.broadcast %120 : f32 to vector<1x1xf32>
    %c0_38 = arith.constant 0 : index
    %c0_39 = arith.constant 0 : index
    %c0_40 = arith.constant 0 : index
    %122 = vector.load %arg8[%c0_38, %c0_39, %c0_40] : memref<1x1x1xf32, #tpu.memory_space<vmem>>, vector<1x1x1xf32>
    %123 = vector.shape_cast %122 : vector<1x1x1xf32> to vector<1x1xf32>
    %124 = vector.shape_cast %121 : vector<1x1xf32> to vector<1x1x1xf32>
    tpu.vector_store %arg8[%c0_38, %c0_39, %c0_40], %124 {strides = array<i32>} : memref<1x1x1xf32, #tpu.memory_space<vmem>>, vector<1x1x1xf32>,
    %125 = vector.shape_cast %107 : vector<1x32x32xf32> to vector<32x32xf32>
    %126 = vector.shape_cast %125 : vector<32x32xf32> to vector<1x32x32xf32>
    %cst_41 = arith.constant dense<0.000000e+00> : vector<1xf32>
    %127 = vector.multi_reduction <add>, %126, %cst_41 [1, 2] : vector<1x32x32xf32> to vector<1xf32>
    %128 = vector.shape_cast %127 : vector<1xf32> to vector<1x1x1xf32>
    %129 = vector.extract %128[0, 0, 0] : f32 from vector<1x1x1xf32>
    %130 = vector.broadcast %129 : f32 to vector<1x1xf32>
    %c0_42 = arith.constant 0 : index
    %c0_43 = arith.constant 0 : index
    %c0_44 = arith.constant 0 : index
    %131 = vector.load %arg9[%c0_42, %c0_43, %c0_44] : memref<1x1x1xf32, #tpu.memory_space<vmem>>, vector<1x1x1xf32>
    %132 = vector.shape_cast %131 : vector<1x1x1xf32> to vector<1x1xf32>
    %133 = vector.shape_cast %130 : vector<1x1xf32> to vector<1x1x1xf32>
    tpu.vector_store %arg9[%c0_42, %c0_43, %c0_44], %133 {strides = array<i32>} : memref<1x1x1xf32, #tpu.memory_space<vmem>>, vector<1x1x1xf32>,
    return
  }
  func.func @transform_0(%arg0: i32) -> (i32, i32) {
    %c0_i32 = arith.constant 0 : i32
    %c0_i32_0 = arith.constant 0 : i32
    %c0_i32_1 = arith.constant 0 : i32
    return %c0_i32, %c0_i32_0 : i32, i32
  }
  func.func @transform_1(%arg0: i32) -> (i32, i32) {
    %c0_i32 = arith.constant 0 : i32
    %c0_i32_0 = arith.constant 0 : i32
    %c0_i32_1 = arith.constant 0 : i32
    return %c0_i32, %c0_i32_0 : i32, i32
  }
  func.func @transform_2(%arg0: i32) -> (i32, i32, i32) {
    %c0_i32 = arith.constant 0 : i32
    %c0_i32_0 = arith.constant 0 : i32
    %c0_i32_1 = arith.constant 0 : i32
    return %arg0, %c0_i32, %c0_i32_0 : i32, i32, i32
  }
  func.func @transform_3(%arg0: i32) -> (i32, i32, i32) {
    %c0_i32 = arith.constant 0 : i32
    %c0_i32_0 = arith.constant 0 : i32
    %c0_i32_1 = arith.constant 0 : i32
    return %arg0, %c0_i32, %c0_i32_0 : i32, i32, i32
  }
  func.func @transform_4(%arg0: i32) -> (i32, i32, i32, i32) {
    %c0_i32 = arith.constant 0 : i32
    %c0_i32_0 = arith.constant 0 : i32
    %c0_i32_1 = arith.constant 0 : i32
    %c0_i32_2 = arith.constant 0 : i32
    return %arg0, %c0_i32, %c0_i32_0, %c0_i32_1 : i32, i32, i32, i32
  }
  func.func @transform_5(%arg0: i32) -> (i32, i32, i32, i32) {
    %c0_i32 = arith.constant 0 : i32
    %c0_i32_0 = arith.constant 0 : i32
    %c0_i32_1 = arith.constant 0 : i32
    %c0_i32_2 = arith.constant 0 : i32
    return %arg0, %c0_i32, %c0_i32_0, %c0_i32_1 : i32, i32, i32, i32
  }
  func.func @transform_6(%arg0: i32) -> (i32, i32, i32) {
    %c0_i32 = arith.constant 0 : i32
    %c0_i32_0 = arith.constant 0 : i32
    %c0_i32_1 = arith.constant 0 : i32
    return %arg0, %c0_i32, %c0_i32_0 : i32, i32, i32
  }
  func.func @transform_7(%arg0: i32) -> (i32, i32, i32) {
    %c0_i32 = arith.constant 0 : i32
    %c0_i32_0 = arith.constant 0 : i32
    %c0_i32_1 = arith.constant 0 : i32
    return %arg0, %c0_i32, %c0_i32_0 : i32, i32, i32
  }
  func.func @transform_8(%arg0: i32) -> (i32, i32, i32) {
    %c0_i32 = arith.constant 0 : i32
    %c0_i32_0 = arith.constant 0 : i32
    %c0_i32_1 = arith.constant 0 : i32
    return %arg0, %c0_i32, %c0_i32_0 : i32, i32, i32
  }
}

</mosaic_0001>

<bundles_post_ra>
// kernel: tpu_custom_call.1
= control target key start
LH: loop header
LB: loop body
LE: loop exit
PB: predicated region body
PF: predicated region fallthrough
CT: control target
= control target key end

     0   :  { %s2954_s0 = inlined_call_operand.hbm [shape: bf16[32,32], index: 0, kind: input, shape index: {}]   ;;  %s2955_s1 = inlined_call_operand.hbm [shape: bf16[32,32], index: 1, kind: input, shape index: {}]   ;;  %s2956_s2 = inlined_call_operand.hbm [shape: f32[2,32,32], index: 2, kind: input, shape index: {}]   ;;  %s2957_s3 = inlined_call_operand.hbm [shape: f32[2,32,32], index: 3, kind: input, shape index: {}]   ;;  %s2958_s4 = inlined_call_operand.hbm [shape: f32[2,2,32,32], index: 4, kind: input, shape index: {}]   ;;  %s2959_s5 = inlined_call_operand.hbm [shape: f32[2,2,32,32], index: 5, kind: input, shape index: {}]   ;;  %s2960_s6 = inlined_call_operand.vmem [shape: f32[2,1,1], index: 6, kind: output, shape index: {0}]   ;;  %s2961_s7 = inlined_call_operand.vmem [shape: f32[2,1,1], index: 7, kind: output, shape index: {1}]   ;;  %s2962_s8 = inlined_call_operand.vmem [shape: f32[2,1,1], index: 8, kind: output, shape index: {2}]  }
   0x1   :  { %2978 = sst [smem:[#allocation16_spill]] %s2954_s0 }
   0x2   :  { %2979 = sst [smem:[#allocation17_spill]] %s2956_s2 }
   0x3   :  { %2980 = sst [smem:[#allocation18_spill]] %s2957_s3 }
   0x4   :  { %2981 = sst [smem:[#allocation19_spill]] %s2958_s4 }
   0x5   :  { %2982 = sst [smem:[#allocation20_spill]] %s2962_s8 }
   0x6   :  { %14 = vsyncpa [#allocation3], 0 }
   0x7   :  { %15 = vsyncpa [#allocation5], 0  ;;  %s2286_s27 = smov 0   ;;  %s2288_s28 = smov 0  }
   0x8   :  { %s2290_s29 = smov 0   ;;  %s2292_s30 = smov 0  }
   0x9 LB: > { %2983 = sst [smem:[#allocation13_spill]] %s2219_s29  ;;  %s2305_s9 = sadd.s32 4294967295, %s2223_s30   ;;  %s2223_s30 = sphi %s2292_s30, %s3011_s30   ;;  %s2219_s29 = sphi %s2290_s29, %s3013_s29   ;;  %s2215_s28 = sphi %s2288_s28, %s3015_s28   ;;  %s2211_s27 = sphi %s2286_s27, %s3014_s27  }
   0xa   : > { %s2308_s10 = sadd.s32 1, %s2223_s30   ;;  %s70_s12 = sadd.s32 1, %s2219_s29 }
   0xb   : > { %2984 = sst [smem:[#allocation14_spill]] %s2308_s10  ;;  %s67_s11 = ssub.s32 %s2223_s30, %s2308_s10 }
   0xc   : > { %p68_p0 = scmp.eq.s32.totalorder %s67_s11, 0  ;;  %p77_p1 = scmp.ne.s32.totalorder %s2219_s29, %s2215_s28 }
   0xd   : > { %p78_p2 = scmp.eq.s32.totalorder %s2223_s30, 0  ;;  %p83_p3 = scmp.ne.s32.totalorder %s2215_s28, %s2211_s27 }
   0xe   : > { %s2318_s13 = scalar_select %p68_p0, %s2219_s29, %s70_s12  }
   0xf   : > { %p2320_p4 = por %p78_p2, %p77_p1  ;;  %p2963_p5 = scmp.eq.s32.totalorder %s2305_s9, 0 }
  0x10   : > { %2985 = sst [smem:[#allocation15_spill]] %s2318_s13  ;;  %p1741_p6 = scmp.ge.s32.totalorder %s2223_s30, 1 }
  0x11   : > { %p250_p7 = scmp.lt.s32.totalorder %s2223_s30, 3  ;;  %p2329_p8 = por %p2963_p5, %p83_p3 }
  0x12   : > { %s2225_s17 = smov [#allocation2]   ;;  %p1946_p12 = scmp.lt.s32.totalorder %s2223_s30, 2 }
  0x13   : > { %s2987_s15 = scalar_select %p2329_p8, 1, 0 }
  0x14   : > { %p2333_p9 = pnand %p1741_p6, %p250_p7  ;;  %s262_s18 = sshll.u32 %s2225_s17, 4  ;;  %s263_s18 = int_to_ptr.vmem [resolvable:$true] %s262_s18 }
  0x15   : > { %s289_s20 = sand.u32 1, %s2223_s30   ;;  %s291_s21 = sand.u32 1, %s2219_s29  }
  0x16   : > { %s2988_s16 = scalar_select %p2333_p9, 1, 0 }
  0x17   : > { %p1924_p10 = pneg %p2333_p9  ;;  %p2350_p13 = pnand %p1946_p12, %p2320_p4 }
  0x18   : > { %s2991_s0 = sld [smem:[#allocation16_spill]] }
  0x19   : > { %p2341_p11 = pnand %p1924_p10, %p2963_p5 }
  0x1a   : > { %s2990_s22 = scalar_select %p2350_p13, 1, 0 }
  0x1b   : > { %s2989_s19 = scalar_select %p2341_p11, 1, 0 }
  0x1c   : > { %p2971_p1 = pneg %p2341_p11 }
  0x1e   : > { %s2005_s25 = scalar_lea.hbm %s2991_s0, 256 }
  0x1f   : > { %p2006_p0 = scmp.ne.s32.totalorder %s2991_s0, %s2005_s25  ;;  %p2012_p4 = scmp.lt.u32.totalorder %s2005_s25, %s2991_s0 }
  0x21   : > { %p2008_p2 = pnand %p2971_p1, %p2006_p0 }
  0x23   : > { %p2009_p3 = pneg %p2008_p2 }
  0x25   : > { %p2014_p6 = pnand %p2012_p4, %p2009_p3 }
  0x27   : > { %2017 = shalt.err (!%p2014_p6)
}
  0x28   : > { %s2018_s14 = scalar_lea.vmem %s263_s18, 256  ;;  %p2026_p5 = scmp.lt.s32.totalorder %s263_s18, %s263_s18 }
  0x29   : > { %p2019_p7 = scmp.ne.s32.totalorder %s263_s18, %s2018_s14  ;;  %p2027_p8 = scmp.lt.s32.totalorder %s2018_s14, %s2018_s14 }
  0x2b   : > { %p2021_p10 = pnand %p2019_p7, %p2971_p1  ;;  %p2028_p9 = por %p2027_p8, %p2026_p5 }
  0x2d   : > { %p2022_p12 = pneg %p2021_p10 }
  0x2f   : > { %p2029_p13 = pnand %p2028_p9, %p2022_p12 }
  0x31   : > { %2032 = shalt.err (!%p2029_p13)
}
  0x32   : > { %s2969_s17 = smov 64   ;;  %s2970_s23 = smov 4  }
  0x33   : > { %1927 = dma.hbm_to_vmem [thread:$0]  (!%p2341_p11), %s2991_s0, 256, %s263_s18, [#allocation3], %s2969_s17, %s2969_s17, %s2970_s23  }
  0x34   : > { %s2381_s26 = sshll.u32 %s291_s21, 5  ;;  %s1794_s27 = sshll.u32 %s2223_s30, 9 }
  0x35   : > { %s2992_s2 = sld [smem:[#allocation17_spill]]  ;;  %s293_s13 = scalar_lea.vmem [#allocation6], %s2381_s26 }
  0x36   : > { %s300_s10 = sshll.u32 %s293_s13, 4  ;;  %s2394_s18 = scalar_lea.sflag [#allocation3], %s289_s20  ;;  %s2392_s10 = int_to_ptr.vmem [resolvable:$true] %s300_s10 }
  0x37   : > { %p2993_p8 = scmp.ne.s32.totalorder %s2990_s22, 0 }
  0x39   : > { %p2400_p9 = pneg %p2993_p8 }
  0x3b   : > { %s2389_s14 = scalar_lea.hbm %s2992_s2, %s1794_s27  ;;  %s2038_s17 = scalar_lea.hbm %s2992_s2, 1024 }
  0x3c   : > { %s2033_s24 = scalar_lea.hbm %s2389_s14, 512  ;;  %p2039_p2 = scmp.lt.u32.totalorder %s2389_s14, %s2992_s2 }
  0x3d   : > { %p2034_p5 = scmp.ne.s32.totalorder %s2389_s14, %s2033_s24  ;;  %p2040_p3 = scmp.lt.u32.totalorder %s2038_s17, %s2033_s24 }
  0x3e   : > { %s2994_s25 = scalar_select %p2400_p9, 1, 0 }
  0x3f   : > { %p2036_p13 = pnand %p2400_p9, %p2034_p5  ;;  %p2041_p4 = por %p2040_p3, %p2039_p2 }
  0x40   : > { %p2042_p6 = scmp.lt.u32.totalorder %s2033_s24, %s2389_s14 }
  0x41   : > { %p2037_p0 = pneg %p2036_p13 }
  0x42   : > { %p2043_p7 = por %p2042_p6, %p2041_p4 }
  0x44   : > { %p2044_p10 = pnand %p2043_p7, %p2037_p0 }
  0x46   : > { %2047 = shalt.err (!%p2044_p10)
}
  0x47   : > { %s2048_s20 = scalar_lea.vmem %s2392_s10, 512  ;;  %s2228_s11 = smov [#allocation6]  }
  0x48   : > { %p2049_p12 = scmp.ne.s32.totalorder %s2392_s10, %s2048_s20  ;;  %s2053_s12 = sshll.u32 %s2228_s11, 4  ;;  %s2054_s12 = int_to_ptr.vmem [resolvable:$false] %s2053_s12 }
  0x49   : > { %s2055_s23 = scalar_lea.vmem %s2054_s12, 1024  ;;  %p2056_p1 = scmp.lt.s32.totalorder %s2392_s10, %s2054_s12 }
  0x4a   : > { %p2051_p5 = pnand %p2049_p12, %p2400_p9  ;;  %p2057_p11 = scmp.lt.s32.totalorder %s2055_s23, %s2048_s20 }
  0x4c   : > { %p2052_p13 = pneg %p2051_p5  ;;  %p2058_p2 = por %p2057_p11, %p2056_p1 }
  0x4e   : > { %p2059_p3 = pnand %p2058_p2, %p2052_p13 }
  0x50   : > { %2062 = shalt.err (!%p2059_p3)
}
  0x51   : > { %s2229_s17 = smov 128   ;;  %s2230_s24 = smov 8  }
  0x52   : > { %1934 = dma.hbm_to_vmem [thread:$0]  (!%p2993_p8), %s2389_s14, 512, %s2392_s10, %s2394_s18, %s2229_s17, %s2229_s17, %s2230_s24  }
  0x53   : > { %s2995_s3 = sld [smem:[#allocation18_spill]]  ;;  %s314_s12 = scalar_lea.vmem [#allocation7], %s2381_s26 }
  0x54   : > { %s321_s23 = sshll.u32 %s314_s12, 4  ;;  %s2437_s0 = sshll.u32 %s291_s21, 6  ;;  %s2439_s23 = int_to_ptr.vmem [resolvable:$true] %s321_s23 }
  0x59   : > { %s2432_s11 = scalar_lea.hbm %s2995_s3, %s1794_s27  ;;  %s2068_s27 = scalar_lea.hbm %s2995_s3, 1024 }
  0x5a   : > { %s2063_s2 = scalar_lea.hbm %s2432_s11, 512  ;;  %p2069_p4 = scmp.lt.u32.totalorder %s2432_s11, %s2995_s3 }
  0x5b   : > { %p2064_p11 = scmp.ne.s32.totalorder %s2432_s11, %s2063_s2  ;;  %p2070_p6 = scmp.lt.u32.totalorder %s2068_s27, %s2063_s2 }
  0x5c   : > { %p2072_p10 = scmp.lt.u32.totalorder %s2063_s2, %s2432_s11 }
  0x5d   : > { %p2066_p1 = pnand %p2064_p11, %p2400_p9  ;;  %p2071_p7 = por %p2070_p6, %p2069_p4 }
  0x5f   : > { %p2067_p0 = pneg %p2066_p1  ;;  %p2073_p12 = por %p2072_p10, %p2071_p7 }
  0x61   : > { %p2074_p5 = pnand %p2073_p12, %p2067_p0 }
  0x63   : > { %2077 = shalt.err (!%p2074_p5)
}
  0x64   : > { %s2078_s21 = scalar_lea.vmem %s2439_s23, 512  ;;  %s2231_s26 = smov [#allocation7]  }
  0x65   : > { %p2079_p13 = scmp.ne.s32.totalorder %s2439_s23, %s2078_s21  ;;  %s2083_s12 = sshll.u32 %s2231_s26, 4  ;;  %s2084_s12 = int_to_ptr.vmem [resolvable:$false] %s2083_s12 }
  0x66   : > { %s2085_s10 = scalar_lea.vmem %s2084_s12, 1024  ;;  %p2086_p11 = scmp.lt.s32.totalorder %s2439_s23, %s2084_s12 }
  0x67   : > { %p2081_p2 = pnand %p2079_p13, %p2400_p9  ;;  %p2087_p1 = scmp.lt.s32.totalorder %s2085_s10, %s2078_s21 }
  0x69   : > { %p2082_p3 = pneg %p2081_p2  ;;  %p2088_p4 = por %p2087_p1, %p2086_p11 }
  0x6b   : > { %p2089_p6 = pnand %p2088_p4, %p2082_p3 }
  0x6d   : > { %2092 = shalt.err (!%p2089_p6)
}
  0x6e   : > { %1937 = dma.hbm_to_vmem [thread:$0]  (!%p2993_p8), %s2432_s11, 512, %s2439_s23, %s2394_s18, %s2229_s17, %s2229_s17, %s2230_s24  }
  0x6f   : > { %s1796_s2 = sshll.u32 %s2223_s30, 10  ;;  %s335_s14 = scalar_lea.vmem [#allocation8], %s2437_s0 }
  0x70   : > { %s342_s27 = sshll.u32 %s335_s14, 4  ;;  %s2996_s4 = sld [smem:[#allocation19_spill]]  ;;  %s2475_s27 = int_to_ptr.vmem [resolvable:$true] %s342_s27 }
  0x76   : > { %s2473_s21 = scalar_lea.hbm %s2996_s4, %s1796_s2  ;;  %s2098_s12 = scalar_lea.hbm %s2996_s4, 2048 }
  0x77   : > { %s2093_s26 = scalar_lea.hbm %s2473_s21, 1024  ;;  %p2099_p12 = scmp.lt.u32.totalorder %s2473_s21, %s2996_s4 }
  0x78   : > { %p2094_p0 = scmp.ne.s32.totalorder %s2473_s21, %s2093_s26  ;;  %p2100_p5 = scmp.lt.u32.totalorder %s2098_s12, %s2093_s26 }
  0x79   : > { %p2102_p2 = scmp.lt.u32.totalorder %s2093_s26, %s2473_s21 }
  0x7a   : > { %p2096_p7 = pnand %p2094_p0, %p2400_p9  ;;  %p2101_p13 = por %p2100_p5, %p2099_p12 }
  0x7c   : > { %p2097_p10 = pneg %p2096_p7  ;;  %p2103_p3 = por %p2102_p2, %p2101_p13 }
  0x7e   : > { %p2104_p11 = pnand %p2103_p3, %p2097_p10 }
  0x80   : > { %2107 = shalt.err (!%p2104_p11)
}
  0x81   : > { %s2108_s13 = scalar_lea.vmem %s2475_s27, 1024  ;;  %s2232_s20 = smov [#allocation8]  }
  0x82   : > { %p2109_p1 = scmp.ne.s32.totalorder %s2475_s27, %s2108_s13  ;;  %s2113_s11 = sshll.u32 %s2232_s20, 4  ;;  %s2114_s11 = int_to_ptr.vmem [resolvable:$false] %s2113_s11 }
  0x83   : > { %s2115_s23 = scalar_lea.vmem %s2114_s11, 2048  ;;  %p2116_p0 = scmp.lt.s32.totalorder %s2475_s27, %s2114_s11 }
  0x84   : > { %p2111_p4 = pnand %p2109_p1, %p2400_p9  ;;  %p2117_p7 = scmp.lt.s32.totalorder %s2115_s23, %s2108_s13 }
  0x86   : > { %p2112_p6 = pneg %p2111_p4  ;;  %p2118_p12 = por %p2117_p7, %p2116_p0 }
  0x88   : > { %p2119_p5 = pnand %p2118_p12, %p2112_p6 }
  0x8a   : > { %2122 = shalt.err (!%p2119_p5)
}
  0x8b   : > { %1940 = dma.hbm_to_vmem [thread:$0]  (!%p2993_p8), %s2473_s21, 1024, %s2475_s27, %s2394_s18, %s2229_s17, %s2229_s17, %s2230_s24  }
  0x8c   : > { %s2233_s26 = smov [#allocation4]   ;;  %s2507_s13 = scalar_lea.hbm %s2959_s5, %s1796_s2 }
  0x8d   : > { %s275_s12 = sshll.u32 %s2233_s26, 4  ;;  %s356_s20 = scalar_lea.vmem [#allocation9], %s2437_s0  ;;  %s276_s12 = int_to_ptr.vmem [resolvable:$true] %s275_s12 }
  0x8e   : > { %s363_s11 = sshll.u32 %s356_s20, 4  ;;  %s2123_s4 = scalar_lea.hbm %s2955_s1, 256  ;;  %s2533_s11 = int_to_ptr.vmem [resolvable:$true] %s363_s11 }
  0x8f   : > { %p2124_p10 = scmp.ne.s32.totalorder %s2955_s1, %s2123_s4  ;;  %p2997_p13 = scmp.ne.s32.totalorder %s2989_s19, 0 }
  0x90   : > { %p2130_p1 = scmp.lt.u32.totalorder %s2123_s4, %s2955_s1 }
  0x91   : > { %p2998_p2 = pneg %p2997_p13 }
  0x93   : > { %p2126_p3 = pnand %p2124_p10, %p2998_p2 }
  0x95   : > { %p2127_p11 = pneg %p2126_p3 }
  0x97   : > { %p2132_p4 = pnand %p2130_p1, %p2127_p11 }
  0x99   : > { %2135 = shalt.err (!%p2132_p4)
}
  0x9a   : > { %s2136_s0 = scalar_lea.vmem %s276_s12, 256  ;;  %p2999_p0 = pmov %p2998_p2 }
  0x9b   : > { %p2137_p6 = scmp.ne.s32.totalorder %s276_s12, %s2136_s0  ;;  %p2144_p5 = scmp.lt.s32.totalorder %s276_s12, %s276_s12 }
  0x9c   : > { %p2145_p8 = scmp.lt.s32.totalorder %s2136_s0, %s2136_s0 }
  0x9d   : > { %p2139_p7 = pnand %p2137_p6, %p2999_p0 }
  0x9e   : > { %p2146_p9 = por %p2145_p8, %p2144_p5 }
  0x9f   : > { %p2140_p12 = pneg %p2139_p7 }
  0xa1   : > { %p2147_p2 = pnand %p2146_p9, %p2140_p12 }
  0xa3   : > { %2150 = shalt.err (!%p2147_p2)
}
  0xa4   : > { %s3000_s3 = smov 4   ;;  %s3001_s8 = smov 64  }
  0xa5   : > { %1930 = dma.hbm_to_vmem [thread:$0]  (!%p2997_p13), %s2955_s1, 256, %s276_s12, [#allocation5], %s3001_s8, %s3001_s8, %s3000_s3  }
  0xa6   : > { %s2151_s2 = scalar_lea.hbm %s2507_s13, 1024  ;;  %p3002_p9 = scmp.ne.s32.totalorder %s2994_s25, 0 }
  0xa7   : > { %p2152_p8 = scmp.ne.s32.totalorder %s2507_s13, %s2151_s2  ;;  %s2156_s26 = scalar_lea.hbm %s2959_s5, 2048 }
  0xa8   : > { %p2157_p11 = scmp.lt.u32.totalorder %s2507_s13, %s2959_s5  ;;  %p2158_p1 = scmp.lt.u32.totalorder %s2156_s26, %s2151_s2 }
  0xa9   : > { %p2154_p10 = pnand %p2152_p8, %p3002_p9  ;;  %p2160_p6 = scmp.lt.u32.totalorder %s2151_s2, %s2507_s13 }
  0xaa   : > { %p2159_p4 = por %p2158_p1, %p2157_p11 }
  0xab   : > { %p2155_p3 = pneg %p2154_p10 }
  0xac   : > { %p2161_p0 = por %p2160_p6, %p2159_p4 }
  0xae   : > { %p2162_p13 = pnand %p2161_p0, %p2155_p3 }
  0xb0   : > { %2165 = shalt.err (!%p2162_p13)
}
  0xb1   : > { %s2166_s12 = scalar_lea.vmem %s2533_s11, 1024  ;;  %s2234_s20 = smov [#allocation9]  }
  0xb2   : > { %p2167_p7 = scmp.ne.s32.totalorder %s2533_s11, %s2166_s12  ;;  %s2171_s23 = sshll.u32 %s2234_s20, 4  ;;  %s2172_s23 = int_to_ptr.vmem [resolvable:$false] %s2171_s23 }
  0xb3   : > { %s2173_s30 = scalar_lea.vmem %s2172_s23, 2048  ;;  %p2174_p2 = scmp.lt.s32.totalorder %s2533_s11, %s2172_s23 }
  0xb4   : > { %p2169_p12 = pnand %p2167_p7, %p3002_p9  ;;  %p2175_p8 = scmp.lt.s32.totalorder %s2173_s30, %s2166_s12 }
  0xb6   : > { %p2170_p5 = pneg %p2169_p12  ;;  %p2176_p10 = por %p2175_p8, %p2174_p2 }
  0xb8   : > { %p2177_p11 = pnand %p2176_p10, %p2170_p5 }
  0xba   : > { %2180 = shalt.err (!%p2177_p11)
}
  0xbb   : > { %p3003_p3 = scmp.ne.s32.totalorder %s2990_s22, 0  ;;  %p3004_p9 = scmp.ne.s32.totalorder %s2988_s16, 0 }
  0xbc   : > { %p3005_p1 = scmp.eq.s32.totalorder (!%p3004_p9), %s2305_s9, 0 }
  0xbd   : > { %1943 = dma.hbm_to_vmem [thread:$0]  (!%p3003_p3), %s2507_s13, 1024, %s2533_s11, %s2394_s18, %s2229_s17, %s2229_s17, %s2230_s24  }
  0xbe   : > { %375 = sbr.rel (%p3004_p9) target bundleno = 1439 (0x59f), region = 44 }
  0xc5   : > { %2198 = dma.done.wait (%p3005_p1), [#allocation3], 256   ;;  %p3006_p4 = pmov %p3005_p1 }
  0xc6   : > { %p3007_p6 = pmov %p3005_p1 }
  0xc7   : > { %2200 = vsyncadd (%p3006_p4), [#allocation3], 4294967040 }
  0xc8   : > { %2202 = dma.done.wait (%p3007_p6), [#allocation5], 256   ;;  %p3008_p0 = pmov %p3005_p1 }
  0xc9   : > { %s385_s22 = sand.u32 1, %s2305_s9   ;;  %s387_s18 = sand.u32 1, %s2215_s28  }
  0xca   : > { %2204 = vsyncadd (%p3008_p0), [#allocation5], 4294967040  ;;  %s1760_s16 = sshll.u32 %s387_s18, 5  ;;  %s386_s25 = scalar_lea.sflag [#allocation3], %s385_s22 }
  0xcb   : > { %s389_s17 = scalar_lea.vmem [#allocation6], %s1760_s16  ;;  %p3009_p13 = scmp.ne.s32.totalorder %s2987_s15, 0 }
  0xcd   : > { %2206 = dma.done.wait (%p3009_p13), %s386_s25, 3072  }
  0xce   : > { %2208 = vsyncadd (%p3009_p13), %s386_s25, 4294964224  ;;  %v1993_v0 = vld [vmem:[#allocation4] sm:$0xff]   ;;  %v2578_v1 = vld [vmem:[#allocation4 + $0x8] sm:$0xff]   ;;  %s398_s24 = scalar_lea.vmem [#allocation7], %s1760_s16  ;;  %vm578_vm0 = vcmask 261120   ;;  %s2235_s15 = smov 32  }
  0xcf   : > { %1822 = vmatprep.subr.bf16.mxu0 %v1993_v0  ;;  %v486_v2 = vld [vmem:[%s389_s17] sm:$0xff]  ;;  %v487_v3 = vld [vmem:[%s389_s17 + $0x8] sm:$0xff]  ;;  %v2580_v4 = vld [vmem:[%s389_s17 + $0x10] sm:$0xff]  ;;  %1870 = vmatprep.subr.bf16.mxu1 %v1993_v0  ;;  %s2236_s13 = smov 64   ;;  %s2237_s11 = smov 96   ;;  %vm917_vm1 = vcmask 523264  }
  0xd0   : > { %1823 = vmatpush3.bf16.msra.mxu0 %v1993_v0  ;;  %v2582_v5 = vpack.c.bf16 %v487_v3, %v486_v2  ;;  %v2584_v6 = vld [vmem:[%s389_s17 + $0x18] sm:$0xff]  ;;  %v490_v7 = vld [vmem:[%s398_s24] sm:$0xff]  ;;  %v491_v8 = vld [vmem:[%s398_s24 + $0x8] sm:$0xff]  ;;  %1872 = vmatpush3.bf16.msra.mxu1 %v1993_v0  ;;  %v494_v9 = vmul.f32 %v486_v2, %v486_v2  ;;  %v495_v10 = vmul.f32 %v487_v3, %v487_v3  ;;  %vm922_vm2 = vcmask 785408   ;;  %s2694_s27 = sshll.u32 %s387_s18, 6  ;;  %s2239_s3 = smov 1  }
  0xd1   : > { %1824 = vmatprep.subr.bf16.mxu0 %v2578_v1  ;;  %v2589_v11 = vpack.c.bf16 %v2584_v6, %v2580_v4  ;;  %v2591_v12 = vpack.c.bf16 %v491_v8, %v490_v7  ;;  %v492_v13 = vld [vmem:[%s398_s24 + $0x10] sm:$0xff]  ;;  %v2593_v14 = vld [vmem:[%s398_s24 + $0x18] sm:$0xff]  ;;  %1871 = vmatprep.subr.bf16.mxu1 %v2578_v1  ;;  %v496_v15 = vmul.f32 %v2580_v4, %v2580_v4  ;;  %s2697_s0 = scalar_lea.vmem [#allocation9], %s2694_s27  ;;  %vm1329_vm3 = vcmask 1040384   ;;  %s2240_s8 = smov 127  }
  0xd2   : > { %v516_v16 = vunpack.c.l.bf16 %v2582_v5  ;;  %v517_v17 = vunpack.c.h.bf16 %v2582_v5  ;;  %v2601_v18 = vpack.c.bf16 %v2593_v14, %v492_v13  ;;  %v2603_v19 = vpack.c.bf16 %v495_v10, %v494_v9  ;;  %s407_s4 = scalar_lea.vmem [#allocation8], %s2694_s27  ;;  %p468_p7 = scmp.lt.s32.totalorder %s2305_s9, 1 }
  0xd3   : > { %v518_v20 = vunpack.c.l.bf16 %v2589_v11  ;;  %v519_v21 = vunpack.c.h.bf16 %v2589_v11  ;;  %v520_v22 = vunpack.c.l.bf16 %v2591_v12  ;;  %v521_v23 = vunpack.c.h.bf16 %v2591_v12  ;;  %s3010_s30 = sld [smem:[#allocation20_spill]] }
  0xd4   : > { %1825 = vmatpush3.bf16.msra.mxu0 %v2578_v1  ;;  %v536_v24 = vsub.f32 %v486_v2, %v516_v16  ;;  %v537_v25 = vsub.f32 %v487_v3, %v517_v17  ;;  %v522_v26 = vunpack.c.l.bf16 %v2601_v18  ;;  %v523_v27 = vunpack.c.h.bf16 %v2601_v18  ;;  %1873 = vmatpush3.bf16.msra.mxu1 %v2578_v1  ;;  %s3017_s9 = smov (!%p468_p7, %s2305_s9), 1 }
  0xd5   : > { %v538_v28 = vsub.f32 %v2580_v4, %v518_v20  ;;  %v539_v29 = vsub.f32 %v2584_v6, %v519_v21  ;;  %v540_v30 = vsub.f32 %v490_v7, %v520_v22  ;;  %v541_v31 = vsub.f32 %v491_v8, %v521_v23  ;;  %1846 = vmatprep.subr.bf16.mxu0 %v1993_v0  ;;  %s470_s19 = scalar_lea.vmem %s2960_s6, %s3017_s9  ;;  %s473_s14 = scalar_lea.vmem %s2961_s7, %s3017_s9 }
  0xd6   : > { %v556_v32 = vpack.c.bf16 %v537_v25, %v536_v24  ;;  %v542_v33 = vsub.f32 %v492_v13, %v522_v26  ;;  %v543_v34 = vsub.f32 %v2593_v14, %v523_v27  ;;  %v524_v35 = vunpack.c.l.bf16 %v2603_v19 }
  0xd7   : > { %v557_v36 = vpack.c.bf16 %v539_v29, %v538_v28  ;;  %v558_v37 = vpack.c.bf16 %v541_v31, %v540_v30  ;;  %v525_v38 = vunpack.c.h.bf16 %v2603_v19  ;;  %v497_v39 = vmul.f32 %v2584_v6, %v2584_v6 }
  0xd8   : > { %1826 = vmatprep.mubr.msk.bf16.mxu0 %vm578_vm0, %v556_v32  ;;  %v559_v40 = vpack.c.bf16 %v543_v34, %v542_v33  ;;  %v544_v41 = vsub.f32 %v494_v9, %v524_v35  ;;  %v498_v42 = vmul.f32 %v490_v7, %v490_v7  ;;  %v499_v43 = vmul.f32 %v491_v8, %v491_v8 }
  0xd9   : > { %1827 = vmatmul.mubr.msk.bf16.vlgmr.msra.gmra.mrb[0].mxu0 %vm578_vm0, %v557_v36  ;;  %v545_v44 = vsub.f32 %v495_v10, %v525_v38  ;;  %v511_v45 = vpack.c.bf16 %v497_v39, %v496_v15  ;;  %v500_v46 = vmul.f32 %v492_v13, %v492_v13  ;;  %v501_v47 = vmul.f32 %v2593_v14, %v2593_v14  ;;  %s476_s22 = scalar_lea.vmem %s3010_s30, %s3017_s9 }
  0xda   : > { %1830 = vmatprep.mubr.msk.bf16.mxu0 %vm578_vm0, %v558_v37  ;;  %1847 = vmatpush3.bf16.msra.mxu0 %v1993_v0  ;;  %v512_v48 = vpack.c.bf16 %v499_v43, %v498_v42  ;;  %v502_v49 = vmul.f32 %v490_v7, %v486_v2  ;;  %v503_v50 = vmul.f32 %v491_v8, %v487_v3  ;;  %vm1372_vm4 = vcmask 1046528  }
  0xdb   : > { %1848 = vmatprep.subr.bf16.mxu0 %v2578_v1  ;;  %v560_v51 = vpack.c.bf16 %v545_v44, %v544_v41  ;;  %v526_v52 = vunpack.c.l.bf16 %v511_v45  ;;  %v527_v53 = vunpack.c.h.bf16 %v511_v45  ;;  %v513_v54 = vpack.c.bf16 %v501_v47, %v500_v46 }
  0xdc   : > { %v528_v55 = vunpack.c.l.bf16 %v512_v48  ;;  %v529_v56 = vunpack.c.h.bf16 %v512_v48  ;;  %v514_v57 = vpack.c.bf16 %v503_v50, %v502_v49  ;;  %v504_v58 = vmul.f32 %v492_v13, %v2580_v4 }
  0xdd   : > { %1834 = vmatprep.mubr.msk.bf16.mxu1 %vm578_vm0, %v560_v51  ;;  %v546_v59 = vsub.f32 %v496_v15, %v526_v52  ;;  %v547_v60 = vsub.f32 %v497_v39, %v527_v53  ;;  %v530_v61 = vunpack.c.l.bf16 %v513_v54  ;;  %v531_v62 = vunpack.c.h.bf16 %v513_v54 }
  0xde   : > { %1849 = vmatpush3.bf16.msra.mxu0 %v2578_v1  ;;  %v548_v63 = vsub.f32 %v498_v42, %v528_v55  ;;  %v549_v0 = vsub.f32 %v499_v43, %v529_v56  ;;  %v532_v2 = vunpack.c.l.bf16 %v514_v57  ;;  %v533_v3 = vunpack.c.h.bf16 %v514_v57 }
  0xdf   : > { %v561_v7 = vpack.c.bf16 %v547_v60, %v546_v59  ;;  %v505_v8 = vmul.f32 %v2593_v14, %v2584_v6  ;;  %v550_v4 = vsub.f32 %v500_v46, %v530_v61  ;;  %v551_v10 = vsub.f32 %v501_v47, %v531_v62 }
  0xe0   : > { %v562_v9 = vpack.c.bf16 %v549_v0, %v548_v63  ;;  %v552_v1 = vsub.f32 %v502_v49, %v532_v2  ;;  %v553_v15 = vsub.f32 %v503_v50, %v533_v3  ;;  %v2238_v59 = vmov 0  }
  0xe1   : > { %1831 = vmatmul.mubr.msk.bf16.gmra.mrb[4].mxu0 %vm578_vm0, %v559_v40  ;;  %1835 = vmatmul.mubr.msk.bf16.vlgmr.msra.gmra.mrb[0].mxu1 %vm578_vm0, %v561_v7  ;;  %v515_v13 = vpack.c.bf16 %v505_v8, %v504_v58  ;;  %v563_v16 = vpack.c.bf16 %v551_v10, %v550_v4  ;;  %vm1514_vm5 = vcmask 252928   ;;  %vm1520_vm6 = vcmask 251904  }
  0xe2   : > { %1850 = vmatprep.mubr.msk.bf16.mxu0 %vm578_vm0, %v2582_v5  ;;  %1838 = vmatprep.mubr.msk.bf16.mxu1 %vm578_vm0, %v562_v9  ;;  %v564_v21 = vpack.c.bf16 %v553_v15, %v552_v1  ;;  %vm1496_vm7 = vcmask 0  }
  0xe3   : > { %v534_v17 = vunpack.c.l.bf16 %v515_v13  ;;  %v535_v20 = vunpack.c.h.bf16 %v515_v13 }
  0xe5   : > { %v554_v6 = vsub.f32 %v504_v58, %v534_v17  ;;  %v555_v14 = vsub.f32 %v505_v8, %v535_v20 }
  0xe7   : > { %v565_v5 = vpack.c.bf16 %v555_v14, %v554_v6 }
  0xe9   : > { %1851 = vmatmul.mubr.msk.bf16.vlgmr.msra.gmra.mrb[0].mxu0 %vm578_vm0, %v2589_v11  ;;  %1839 = vmatmul.mubr.msk.bf16.gmra.mrb[4].mxu1 %vm578_vm0, %v563_v16 }
  0xea   : > { %1854 = vmatprep.mubr.msk.bf16.mxu0 %vm578_vm0, %v2591_v12  ;;  %1842 = vmatprep.mubr.msk.bf16.mxu1 %vm578_vm0, %v564_v21 }
  0xf1   : > { %1855 = vmatmul.mubr.msk.bf16.gmra.mrb[4].mxu0 %vm578_vm0, %v2601_v18  ;;  %1843 = vmatmul.mubr.msk.bf16.gmra.mrb[8].mxu1 %vm578_vm0, %v565_v5 }
  0xf2   : > { %1858 = vmatprep.mubr.msk.bf16.mxu0 %vm578_vm0, %v2603_v19  ;;  %999 = vmatprep.mubr.bf16.mxu1 %v2238_v59 }
  0xf9   : > { %1859 = vmatmul.mubr.msk.bf16.gmra.mrb[8].mxu0 %vm578_vm0, %v511_v45 }
  0xfa   : > { %1862 = vmatprep.mubr.msk.bf16.mxu0 %vm578_vm0, %v512_v48 }
 0x101   : > { %1863 = vmatmul.mubr.msk.bf16.gmra.mrb[12].mxu0 %vm578_vm0, %v513_v54 }
 0x102   : > { %1866 = vmatprep.mubr.msk.bf16.mxu0 %vm578_vm0, %v514_v57 }
 0x109   : > { %1867 = vmatmul.mubr.msk.bf16.gmra.mrb[16].mxu0 %vm578_vm0, %v515_v13 }
 0x1b4   : > { %v1836_v11 = vpop.f32.mrb[0].mxu1 }
 0x1b5   : > { %v675_v12 = vpop.f32.mrb[1].mxu1 }
 0x1b6   : > { %v1837_v22 = vpop.f32.mrb[2].mxu1 }
 0x1b7   : > { %v678_v23 = vpop.f32.mrb[3].mxu1 }
 0x1bc   : > { %v2652_v18 = vpop.f32.mrb[0].mxu0  ;;  %v1840_v24 = vpop.f32.mrb[4].mxu1 }
 0x1bd   : > { %v2654_v25 = vpop.f32.mrb[1].mxu0  ;;  %v691_v19 = vpop.f32.mrb[5].mxu1 }
 0x1be   : > { %v2656_v26 = vpop.f32.mrb[2].mxu0  ;;  %v1841_v27 = vpop.f32.mrb[6].mxu1 }
 0x1bf   : > { %v2658_v28 = vpop.f32.mrb[3].mxu0  ;;  %v694_v29 = vpop.f32.mrb[7].mxu1 }
 0x1c4   : > { %v1856_v30 = vpop.f32.mrb[4].mxu0  ;;  %v1844_v31 = vpop.f32.mrb[8].mxu1 }
 0x1c5   : > { %873 = vrot.lane.b32.xlu0 %v1856_v30, %s2235_s15  ;;  %v802_v32 = vpop.f32.mrb[5].mxu0  ;;  %v707_v33 = vpop.f32.mrb[9].mxu1 }
 0x1c6   : > { %v1857_v34 = vpop.f32.mrb[6].mxu0  ;;  %v1845_v35 = vpop.f32.mrb[10].mxu1 }
 0x1c7   : > { %875 = vrot.lane.b32.xlu1 %v1857_v34, %s2235_s15  ;;  %v805_v36 = vpop.f32.mrb[7].mxu0  ;;  %v710_v37 = vpop.f32.mrb[11].mxu1 }
 0x1c9   : > { %869 = vrot.lane.b32.xlu0 %v802_v32, %s2235_s15 }
 0x1cc   : > { %v1860_v38 = vpop.f32.mrb[8].mxu0 }
 0x1cd   : > { %v827_v39 = vadd.f32 %v1860_v38, %v1836_v11  ;;  %871 = vrot.lane.b32.xlu0 %v805_v36, %s2235_s15  ;;  %v818_v40 = vpop.f32.mrb[9].mxu0 }
 0x1ce   : > { %v819_v41 = vadd.f32 %v818_v40, %v675_v12  ;;  %v1861_v42 = vpop.f32.mrb[10].mxu0 }
 0x1cf   : > { %v830_v43 = vadd.f32 %v1861_v42, %v1837_v22  ;;  %v821_v44 = vpop.f32.mrb[11].mxu0 }
 0x1d0   : > { %v822_v45 = vadd.f32 %v821_v44, %v678_v23  ;;  %885 = vrot.lane.b32.xlu1 %v819_v41, %s2236_s13 }
 0x1d1   : > { %889 = vrot.lane.b32.xlu0 %v827_v39, %s2236_s13 }
 0x1d4   : > { %v1864_v46 = vpop.f32.mrb[12].mxu0  ;;  %891 = vrot.lane.b32.xlu1 %v830_v43, %s2236_s13 }
 0x1d5   : > { %v843_v47 = vadd.f32 %v1864_v46, %v1840_v24  ;;  %v834_v48 = vpop.f32.mrb[13].mxu0 }
 0x1d6   : > { %v835_v49 = vadd.f32 %v834_v48, %v691_v19  ;;  %v1865_v50 = vpop.f32.mrb[14].mxu0  ;;  %v1996_v48 = vld [vmem:[#allocation2 + $0x8] sm:$0xff]  }
 0x1d7   : > { %v846_v51 = vadd.f32 %v1865_v50, %v1841_v27  ;;  %v837_v52 = vpop.f32.mrb[15].mxu0  ;;  %v2703_v50 = vld [vmem:[%s2697_s0 + $0x28] sm:$0xff] }
 0x1d8   : > { %v838_v53 = vadd.f32 %v837_v52, %v694_v29  ;;  %901 = vrot.lane.b32.xlu0 %v835_v49, %s2237_s11  ;;  %887 = vrot.lane.b32.xlu1 %v822_v45, %s2236_s13  ;;  %v2700_v49 = vld [vmem:[%s2697_s0 + $0x30] sm:$0xff]  ;;  %v2709_v52 = vld [vmem:[%s2697_s0 + $0x8] sm:$0xff] }
 0x1dc   : > { %905 = vrot.lane.b32.xlu0 %v843_v47, %s2237_s11  ;;  %903 = vrot.lane.b32.xlu1 %v838_v53, %s2237_s11  ;;  %v1868_v54 = vpop.f32.mrb[16].mxu0  ;;  %v1995_v47 = vld [vmem:[#allocation2] sm:$0xff]   ;;  %v1338_v53 = vrot.slane %v2703_v50, 7 }
 0x1dd   : > { %v859_v55 = vadd.f32 %v1868_v54, %v1844_v31  ;;  %v850_v56 = vpop.f32.mrb[17].mxu0  ;;  %v1340_v54 = vrot.slane %v2700_v49, 7 }
 0x1de   : > { %v851_v57 = vadd.f32 %v850_v56, %v707_v33  ;;  %v1869_v58 = vpop.f32.mrb[18].mxu0 }
 0x1df   : > { %v862_v60 = vadd.f32 %v1869_v58, %v1845_v35  ;;  %v853_v61 = vpop.f32.mrb[19].mxu0 }
 0x1e0   : > { %907 = vrot.lane.b32.xlu1 %v846_v51, %s2237_s11  ;;  %v854_v62 = vadd.f32 %v853_v61, %v710_v37  ;;  %v2706_v51 = vld [vmem:[%s2697_s0] sm:$0xff] }
 0x1e1   : > { %v930_v63 = vpack.c.bf16 %v862_v60, %v859_v55  ;;  %v1330_v56 = vrot.slane %v2706_v51, 7 }
 0x1e2   : > { %v928_v0 = vpack.c.bf16 %v854_v62, %v851_v57 }
 0x1e3   : > { %v936_v2 = vunpack.c.l.bf16 %v930_v63  ;;  %v938_v3 = vunpack.c.h.bf16 %v930_v63 }
 0x1e4   : > { %v932_v7 = vunpack.c.l.bf16 %v928_v0  ;;  %v934_v8 = vunpack.c.h.bf16 %v928_v0 }
 0x1e5   : > { %v946_v9 = vsub.f32 %v862_v60, %v938_v3  ;;  %v944_v4 = vsub.f32 %v859_v55, %v936_v2  ;;  %v2723_v60 = vld [vmem:[%s2697_s0 + $0x10] sm:$0xff] }
 0x1e6   : > { %v942_v10 = vsub.f32 %v854_v62, %v934_v8  ;;  %v940_v13 = vsub.f32 %v851_v57, %v932_v7  ;;  %v1331_v57 = vrot.slane %v2709_v52, 7  ;;  %v1333_v62 = vrot.slane %v2723_v60, 7  ;;  %v2737_v7 = vld [vmem:[%s2697_s0 + $0x18] sm:$0xff] }
 0x1e7   : > { %v950_v1 = vpack.c.bf16 %v946_v9, %v944_v4  ;;  %v2740_v8 = vld [vmem:[%s2697_s0 + $0x38] sm:$0xff]  ;;  %v1341_v9 = vsel %vm1329_vm3, %v1338_v53, %v1340_v54  ;;  %v1335_v4 = vrot.slane %v2737_v7, 7 }
 0x1e8   : > { %v948_v15 = vpack.c.bf16 %v942_v10, %v940_v13  ;;  %v1342_v10 = vrot.slane %v2740_v8, 7  ;;  %v1332_v13 = vsel %vm1329_vm3, %v1330_v56, %v1331_v57 }
 0x1ea   : > { %967 = vmatprep.subr.bf16.mxu1 %v948_v15 }
 0x237   : > { %v874_v16 = vpop.permute.xlu0 %873 }
 0x238   : > { %v915_v33 = vsel %vm578_vm0, %v2652_v18, %v874_v16 }
 0x239   : > { %v876_v20 = vpop.permute.xlu1 %875 }
 0x23a   : > { %v916_v34 = vsel %vm578_vm0, %v2656_v26, %v876_v20  ;;  %v1358_v20 = vsub.f32 %v2700_v49, %v1341_v9 }
 0x23b   : > { %v870_v17 = vpop.permute.xlu0 %869 }
 0x23c   : > { %v913_v22 = vsel %vm578_vm0, %v2654_v25, %v870_v17 }
 0x23f   : > { %v872_v21 = vpop.permute.xlu0 %871 }
 0x240   : > { %v914_v23 = vsel %vm578_vm0, %v2658_v28, %v872_v21  ;;  %v1352_v21 = vsub.f32 %v2706_v51, %v1330_v56 }
 0x242   : > { %v886_v6 = vpop.permute.xlu1 %885 }
 0x243   : > { %v890_v14 = vpop.permute.xlu0 %889  ;;  %v918_v24 = vsel %vm917_vm1, %v913_v22, %v886_v6  ;;  %v1353_v6 = vsub.f32 %v2709_v52, %v1332_v13  ;;  %v1360_v22 = vmul.f32 15.5, %v1352_v21 }
 0x244   : > { %v920_v35 = vsel %vm917_vm1, %v915_v33, %v890_v14  ;;  %v1334_v14 = vsel %vm1329_vm3, %v1331_v57, %v1333_v62  ;;  %v1366_v33 = vmul.f32 15.5, %v1358_v20 }
 0x246   : > { %v892_v5 = vpop.permute.xlu1 %891 }
 0x247   : > { %v921_v25 = vsel %vm917_vm1, %v916_v34, %v892_v5  ;;  %v1354_v5 = vsub.f32 %v2723_v60, %v1334_v14  ;;  %v1400_v34 = vrot.slane %v1360_v22, 1 }
 0x24a   : > { %v902_v11 = vpop.permute.xlu0 %901  ;;  %v888_v12 = vpop.permute.xlu1 %887 }
 0x24b   : > { %v919_v19 = vsel %vm917_vm1, %v914_v23, %v888_v12  ;;  %v923_v29 = vsel %vm922_vm2, %v918_v24, %v902_v11  ;;  %v1361_v23 = vmul.f32 15.5, %v1353_v6  ;;  %v1343_v24 = vsel %vm1329_vm3, %v1340_v54, %v1342_v10 }
 0x24e   : > { %v904_v27 = vpop.permute.xlu1 %903  ;;  %v906_v31 = vpop.permute.xlu0 %905 }
 0x24f   : > { %v924_v30 = vsel %vm922_vm2, %v919_v19, %v904_v27  ;;  %v925_v38 = vsel %vm922_vm2, %v920_v35, %v906_v31  ;;  %v1359_v31 = vsub.f32 %v2740_v8, %v1343_v24  ;;  %v1401_v35 = vrot.slane %v1361_v23, 1 }
 0x250   : > { %v927_v32 = vpack.c.bf16 %v924_v30, %v923_v29 }
 0x252   : > { %v931_v36 = vunpack.c.l.bf16 %v927_v32  ;;  %v933_v37 = vunpack.c.h.bf16 %v927_v32  ;;  %v908_v28 = vpop.permute.xlu1 %907 }
 0x253   : > { %v926_v39 = vsel %vm922_vm2, %v921_v25, %v908_v28  ;;  %v1336_v25 = vsel %vm1329_vm3, %v1333_v62, %v1335_v4 }
 0x254   : > { %v939_v40 = vsub.f32 %v923_v29, %v931_v36  ;;  %v941_v41 = vsub.f32 %v924_v30, %v933_v37  ;;  %v929_v42 = vpack.c.bf16 %v926_v39, %v925_v38  ;;  %v1362_v30 = vmul.f32 15.5, %v1354_v5 }
 0x256   : > { %v947_v43 = vpack.c.bf16 %v941_v41, %v939_v40  ;;  %v935_v44 = vunpack.c.l.bf16 %v929_v42  ;;  %v937_v45 = vunpack.c.h.bf16 %v929_v42  ;;  %v2783_v40 = vmul.f32 15.5, %v1359_v31 }
 0x257   : > { %v1355_v41 = vsub.f32 %v2737_v7, %v1336_v25 }
 0x258   : > { %v943_v46 = vsub.f32 %v925_v38, %v935_v44  ;;  %v945_v18 = vsub.f32 %v926_v39, %v937_v45  ;;  %968 = vmatpush1.bf16.msra.mxu1 %v947_v43  ;;  %v1403_v38 = vrot.slane %v1362_v30, 1  ;;  %v2781_v39 = vsel %vm1372_vm4, %v1400_v34, %v1401_v35 }
 0x259   : > { %969 = vmatprep.subr.bf16.mxu1 %v950_v1  ;;  %v1376_v45 = vrot.slane %v1366_v33, 1 }
 0x25a   : > { %v949_v26 = vpack.c.bf16 %v945_v18, %v943_v46  ;;  %v1404_v46 = vsel %vm1372_vm4, %v1401_v35, %v1403_v38  ;;  %v1378_v18 = vrot.slane %v2783_v40, 1 }
 0x25c   : > { %970 = vmatpush1.bf16.msra.mxu1 %v949_v26  ;;  %v2792_v26 = vmul.f32 15.5, %v1355_v41  ;;  %v1379_v54 = vsel %vm1372_vm4, %v1376_v45, %v1378_v18 }
 0x25d   : > { %1020 = vmatprep.subr.bf16.mxu1 %v928_v0 }
 0x25e   : > { %v1405_v56 = vrot.slane %v2792_v26, 1 }
 0x25f   : > { %1788 = vmatmul.mubr.msk.bf16.vlgmr.msra.gmra.mrb[12].mxu1 %vm578_vm0, %v1995_v47 }
 0x260   : > { %1021 = vmatpush1.bf16.msra.mxu1 %v927_v32  ;;  %1009 = vmatprep.mubr.bf16.mxu1 %v2238_v59  ;;  %v1406_v62 = vsel %vm1372_vm4, %v1403_v38, %v1405_v56 }
 0x261   : > { %1022 = vmatprep.subr.bf16.mxu1 %v930_v63 }
 0x264   : > { %1023 = vmatpush1.bf16.msra.mxu1 %v929_v42 }
 0x267   : > { %1789 = vmatmul.mubr.msk.bf16.gmra.mrb[16].mxu1 %vm578_vm0, %v1996_v48 }
 0x268   : > { %1052 = vmatprep.mubr.bf16.mxu1 %v2238_v59 }
 0x26f   : > { %1790 = vmatmul.mubr.msk.bf16.vlgmr.msra.gmra.mrb[12].mxu1 %vm578_vm0, %v1995_v47 }
 0x270   : > { %1062 = vmatprep.mubr.bf16.mxu1 %v2238_v59 }
 0x277   : > { %1791 = vmatmul.mubr.msk.bf16.gmra.mrb[16].mxu1 %vm578_vm0, %v1996_v48 }
 0x342   : > { %v2713_v55 = vpop.f32.mrb[12].mxu1 }
 0x343   : > { %v2718_v58 = vmul.f32 0.0022675737, %v2713_v55  ;;  %v2720_v59 = vpop.f32.mrb[13].mxu1 }
 0x344   : > { %v2725_v61 = vpop.f32.mrb[14].mxu1 }
 0x345   : > { %v2729_v63 = vmul.f32 0.0022675737, %v2725_v61  ;;  %v2731_v0 = vpop.f32.mrb[15].mxu1  ;;  %v1193_v2 = vmul.f32 %v2718_v58, %v2718_v58  ;;  %v1165_v3 = vmul.f32 2.0, %v2718_v58 }
 0x347   : > { %v1197_v1 = vmul.f32 441.0, %v1193_v2  ;;  %v1169_v15 = vmul.f32 %v1165_v3, %v2713_v55  ;;  %v1194_v16 = vmul.f32 %v2729_v63, %v2729_v63  ;;  %v1166_v17 = vmul.f32 2.0, %v2729_v63  ;;  %v2813_v3 = vld [vmem:[%s2697_s0 + $0x20] sm:$0xff] }
 0x348   : > { %v1337_v9 = vrot.slane %v2813_v3, 7 }
 0x349   : > { %1205 = vrot.lane.b32.xlu1 %v1197_v1, %s2236_s13  ;;  %1177 = vrot.lane.b32.xlu0 %v1169_v15, %s2236_s13  ;;  %v1198_v12 = vmul.f32 441.0, %v1194_v16  ;;  %v1170_v29 = vmul.f32 %v1166_v17, %v2725_v61 }
 0x34a   : > { %v2759_v11 = vpop.f32.mrb[16].mxu1  ;;  %v1339_v4 = vsel %vm1329_vm3, %v1337_v9, %v1338_v53  ;;  %v1356_v10 = vsub.f32 %v2813_v3, %v1337_v9 }
 0x34b   : > { %v2763_v19 = vmul.f32 0.0022675737, %v2759_v11  ;;  %v2765_v27 = vpop.f32.mrb[17].mxu1  ;;  %v1357_v13 = vsub.f32 %v2703_v50, %v1339_v4 }
 0x34c   : > { %v2769_v32 = vpop.f32.mrb[18].mxu1  ;;  %v1364_v1 = vmul.f32 15.5, %v1356_v10 }
 0x34d   : > { %v2773_v36 = vmul.f32 0.0022675737, %v2769_v32  ;;  %1207 = vrot.lane.b32.xlu0 %v1198_v12, %s2236_s13  ;;  %1179 = vrot.lane.b32.xlu1 %v1170_v29, %s2236_s13  ;;  %v2777_v37 = vpop.f32.mrb[19].mxu1  ;;  %v1167_v28 = vmul.f32 2.0, %v2763_v19  ;;  %v1195_v44 = vmul.f32 %v2763_v19, %v2763_v19  ;;  %v1365_v15 = vmul.f32 15.5, %v1357_v13 }
 0x34e   : > { %v1373_v16 = vrot.slane %v1364_v1, 1 }
 0x34f   : > { %v1171_v42 = vmul.f32 %v1167_v28, %v2759_v11  ;;  %v1168_v43 = vmul.f32 2.0, %v2773_v36  ;;  %v1196_v48 = vmul.f32 %v2773_v36, %v2773_v36  ;;  %v1199_v57 = vmul.f32 441.0, %v1195_v44 }
 0x350   : > { %v1374_v53 = vrot.slane %v1365_v15, 1 }
 0x351   : > { %1181 = vrot.lane.b32.xlu0 %v1171_v42, %s2236_s13  ;;  %v1172_v47 = vmul.f32 %v1168_v43, %v2769_v32  ;;  %v1200_v2 = vmul.f32 441.0, %v1196_v48 }
 0x352   : > { %v1375_v17 = vsel %vm1372_vm4, %v1373_v16, %v1374_v53  ;;  %v1377_v20 = vsel %vm1372_vm4, %v1374_v53, %v1376_v45 }
 0x353   : > { %1183 = vrot.lane.b32.xlu1 %v1172_v47, %s2236_s13 }
 0x355   : > { %1209 = vrot.lane.b32.xlu0 %v1199_v57, %s2236_s13 }
 0x357   : > { %1211 = vrot.lane.b32.xlu1 %v1200_v2, %s2236_s13 }
 0x359   : > { %1081 = vrot.lane.b32.xlu0 %v2713_v55, %s2235_s15 }
 0x35b   : > { %1083 = vrot.lane.b32.xlu1 %v2725_v61, %s2235_s15 }
 0x35d   : > { %1289 = vrot.lane.b32.xlu0 %v2706_v51, %s2239_s3 }
 0x35f   : > { %1291 = vrot.lane.b32.xlu1 %v2709_v52, %s2239_s3 }
 0x361   : > { %1297 = vrot.lane.b32.xlu0 %v2813_v3, %s2239_s3 }
 0x363   : > { %1299 = vrot.lane.b32.xlu1 %v2703_v50, %s2239_s3 }
 0x365   : > { %1085 = vrot.lane.b32.xlu0 %v2759_v11, %s2235_s15 }
 0x367   : > { %1293 = vrot.lane.b32.xlu1 %v2723_v60, %s2239_s3 }
 0x369   : > { %1301 = vrot.lane.b32.xlu0 %v2700_v49, %s2239_s3 }
 0x36b   : > { %1087 = vrot.lane.b32.xlu1 %v2769_v32, %s2235_s15 }
 0x36d   : > { %1295 = vrot.lane.b32.xlu0 %v2737_v7, %s2239_s3 }
 0x36f   : > { %1303 = vrot.lane.b32.xlu1 %v2740_v8, %s2239_s3 }
 0x371   : > { %1380 = vrot.lane.b32.xlu0 %v1375_v17, %s2239_s3 }
 0x373   : > { %1382 = vrot.lane.b32.xlu1 %v1377_v20, %s2239_s3 }
 0x3bb   : > { %v1206_v21 = vpop.permute.xlu1 %1205  ;;  %v1178_v6 = vpop.permute.xlu0 %1177 }
 0x3bc   : > { %v1189_v14 = vsub.f32 %v2713_v55, %v1178_v6 }
 0x3be   : > { %v1217_v5 = vadd.f32 %v1206_v21, %v1189_v14 }
 0x3bf   : > { %v1208_v12 = vpop.permute.xlu0 %1207  ;;  %v1180_v22 = vpop.permute.xlu1 %1179 }
 0x3c0   : > { %v1190_v23 = vsub.f32 %v2725_v61, %v1180_v22  ;;  %1229 = vrot.lane.b32.xlu0 %v1217_v5, %s2237_s11 }
 0x3c2   : > { %v1218_v24 = vadd.f32 %v1208_v12, %v1190_v23 }
 0x3c3   : > { %v1182_v29 = vpop.permute.xlu0 %1181 }
 0x3c4   : > { %1231 = vrot.lane.b32.xlu1 %v1218_v24, %s2237_s11  ;;  %v1191_v31 = vsub.f32 %v2759_v11, %v1182_v29 }
 0x3c5   : > { %v1184_v30 = vpop.permute.xlu1 %1183 }
 0x3c6   : > { %v1192_v34 = vsub.f32 %v2769_v32, %v1184_v30 }
 0x3c7   : > { %v1210_v33 = vpop.permute.xlu0 %1209 }
 0x3c8   : > { %v1219_v35 = vadd.f32 %v1210_v33, %v1191_v31 }
 0x3c9   : > { %v1212_v25 = vpop.permute.xlu1 %1211 }
 0x3ca   : > { %v1220_v28 = vadd.f32 %v1212_v25, %v1192_v34  ;;  %1233 = vrot.lane.b32.xlu0 %v1219_v35, %s2237_s11 }
 0x3cb   : > { %v1082_v38 = vpop.permute.xlu0 %1081 }
 0x3cc   : > { %1235 = vrot.lane.b32.xlu1 %v1220_v28, %s2237_s11  ;;  %v1093_v44 = vmul.f32 %v1082_v38, %v2718_v58 }
 0x3cd   : > { %v1084_v41 = vpop.permute.xlu1 %1083 }
 0x3ce   : > { %1407 = vrot.lane.b32.xlu0 %v2781_v39, %s2239_s3  ;;  %v1094_v39 = vmul.f32 %v1084_v41, %v2729_v63 }
 0x3cf   : > { %v1290_v42 = vpop.permute.xlu0 %1289 }
 0x3d0   : > { %1409 = vrot.lane.b32.xlu1 %v1404_v46, %s2239_s3  ;;  %v1313_v2 = vsub.f32 %v2706_v51, %v1290_v42 }
 0x3d1   : > { %v1292_v43 = vpop.permute.xlu1 %1291 }
 0x3d2   : > { %1384 = vrot.lane.b32.xlu0 %v1379_v54, %s2239_s3  ;;  %v1314_v4 = vsub.f32 %v2709_v52, %v1292_v43 }
 0x3d3   : > { %v1298_v45 = vpop.permute.xlu0 %1297 }
 0x3d4   : > { %1411 = vrot.lane.b32.xlu1 %v1406_v62, %s2239_s3  ;;  %v1317_v10 = vsub.f32 %v2813_v3, %v1298_v45  ;;  %v1322_v17 = vmul.f32 15.5, %v1314_v4 }
 0x3d5   : > { %v1300_v46 = vpop.permute.xlu1 %1299 }
 0x3d6   : > { %1386 = vrot.lane.b32.xlu0 %v1378_v18, %s2239_s3  ;;  %v1318_v15 = vsub.f32 %v2703_v50, %v1300_v46  ;;  %v1325_v20 = vmul.f32 15.5, %v1317_v10 }
 0x3d7   : > { %v1086_v40 = vpop.permute.xlu0 %1085 }
 0x3d8   : > { %1413 = vrot.lane.b32.xlu1 %v1405_v56, %s2239_s3  ;;  %v1095_v26 = vmul.f32 %v1086_v40, %v2763_v19  ;;  %v1326_v22 = vmul.f32 15.5, %v1318_v15 }
 0x3d9   : > { %v1294_v18 = vpop.permute.xlu1 %1293 }
 0x3da   : > { %1101 = vrot.lane.b32.xlu0 %v1093_v44, %s2237_s11  ;;  %v1315_v50 = vsub.f32 %v2723_v60, %v1294_v18 }
 0x3dc   : > { %1103 = vrot.lane.b32.xlu1 %v1094_v39, %s2237_s11 }
 0x3dd   : > { %v1088_v47 = vpop.permute.xlu1 %1087 }
 0x3de   : > { %1117 = vrot.lane.b32.xlu0 %v2713_v55, %s2237_s11  ;;  %v1096_v55 = vmul.f32 %v1088_v47, %v2773_v36 }
 0x3e0   : > { %1119 = vrot.lane.b32.xlu1 %v2725_v61, %s2237_s11  ;;  %v1302_v61 = vpop.permute.xlu0 %1301 }
 0x3e1   : > { %v1304_v48 = vpop.permute.xlu1 %1303  ;;  %v1319_v3 = vsub.f32 %v2700_v49, %v1302_v61  ;;  %v1323_v49 = vmul.f32 15.5, %v1315_v50 }
 0x3e2   : > { %1141 = vrot.lane.b32.xlu0 %v2718_v58, %s2237_s11 }
 0x3e3   : > { %v1327_v41 = vmul.f32 15.5, %v1319_v3 }
 0x3e4   : > { %1143 = vrot.lane.b32.xlu1 %v2729_v63, %s2237_s11  ;;  %v1296_v54 = vpop.permute.xlu0 %1295 }
 0x3e5   : > { %v1383_v56 = vpop.permute.xlu1 %1382  ;;  %v1316_v34 = vsub.f32 %v2737_v7, %v1296_v54 }
 0x3e6   : > { %1105 = vrot.lane.b32.xlu0 %v1095_v26, %s2237_s11 }
 0x3e7   : > { %v1324_v39 = vmul.f32 15.5, %v1316_v34 }
 0x3e8   : > { %1121 = vrot.lane.b32.xlu1 %v2759_v11, %s2237_s11  ;;  %v1381_v57 = vpop.permute.xlu0 %1380 }
 0x3ea   : > { %1145 = vrot.lane.b32.xlu0 %v2763_v19, %s2237_s11 }
 0x3ec   : > { %1107 = vrot.lane.b32.xlu1 %v1096_v55, %s2237_s11 }
 0x3ee   : > { %1123 = vrot.lane.b32.xlu0 %v2769_v32, %s2237_s11  ;;  %v1321_v32 = vmul.f32 15.5, %v1313_v2 }
 0x3f0   : > { %1147 = vrot.lane.b32.xlu1 %v2773_v36, %s2237_s11  ;;  %v1392_v51 = vmul.f32 %v1381_v57, %v1321_v32 }
 0x432   : > { %v1230_v11 = vpop.permute.xlu0 %1229 }
 0x433   : > { %v1241_v13 = vmul.f32 %v1230_v11, %v1217_v5  ;;  %v1393_v5 = vmul.f32 %v1383_v56, %v1322_v17  ;;  %v1439_v17 = vld [vmem:[%s407_s4 + $0x20] sm:$0xff] }
 0x435   : > { %v1245_v6 = vadd.f32 1e-05, %v1241_v13 }
 0x436   : > { %v1232_v62 = vpop.permute.xlu1 %1231 }
 0x437   : > { %v1242_v9 = vmul.f32 %v1232_v62, %v1218_v24 }
 0x439   : > { %v1246_v16 = vadd.f32 1e-05, %v1242_v9 }
 0x43b   : > { %1997 = vrcp.f32 %v1246_v16  ;;  %v1435_v16 = vld [vmem:[%s407_s4] sm:$0xff] }
 0x43c   : > { %v1234_v1 = vpop.permute.xlu0 %1233  ;;  %1999 = vrcp.f32 %v1245_v6  ;;  %v1437_v6 = vld [vmem:[%s407_s4 + $0x10] sm:$0xff]  ;;  %v1459_v34 = vmul.f32 %v1435_v16, %v1435_v16 }
 0x43d   : > { %v1243_v14 = vmul.f32 %v1234_v1, %v1219_v35  ;;  %v1320_v35 = vsub.f32 %v2740_v8, %v1304_v48 }
 0x43e   : > { %v1236_v53 = vpop.permute.xlu1 %1235 }
 0x43f   : > { %v1244_v21 = vmul.f32 %v1236_v53, %v1220_v28  ;;  %v1247_v31 = vadd.f32 1e-05, %v1243_v14  ;;  %v1328_v45 = vmul.f32 15.5, %v1320_v35  ;;  %v1436_v53 = vld [vmem:[%s407_s4 + $0x8] sm:$0xff]  ;;  %v1441_v14 = vld [vmem:[%s407_s4 + $0x30] sm:$0xff] }
 0x440   : > { %v1408_v12 = vpop.permute.xlu0 %1407 }
 0x441   : > { %v1419_v23 = vmul.f32 %v1408_v12, %v1325_v20  ;;  %v1248_v52 = vadd.f32 1e-05, %v1244_v21  ;;  %v1440_v20 = vld [vmem:[%s407_s4 + $0x28] sm:$0xff]  ;;  %v1443_v12 = vand.u32 2147483647, %v1435_v16 }
 0x442   : > { %v1410_v24 = vpop.permute.xlu1 %1409  ;;  %v1448_v3 = vand.u32 2147483647, %v1440_v20 }
 0x443   : > { %v1423_v29 = vsub.f32 %v1392_v51, %v1419_v23  ;;  %v1420_v30 = vmul.f32 %v1410_v24, %v1326_v22  ;;  %2001 = vrcp.f32 %v1248_v52  ;;  %v1438_v22 = vld [vmem:[%s407_s4 + $0x18] sm:$0xff]  ;;  %v1444_v23 = vand.u32 2147483647, %v1436_v53 }
 0x444   : > { %v1385_v33 = vpop.permute.xlu0 %1384  ;;  %2003 = vrcp.f32 %v1247_v31  ;;  %v1442_v51 = vld [vmem:[%s407_s4 + $0x38] sm:$0xff]  ;;  %v1447_v52 = vand.u32 2147483647, %v1439_v17  ;;  %v1446_v50 = vand.u32 2147483647, %v1438_v22 }
 0x445   : > { %v1427_v25 = vsub.f32 0.0, %v1423_v29  ;;  %v1424_v28 = vsub.f32 %v1393_v5, %v1420_v30  ;;  %v1394_v7 = vmul.f32 %v1385_v33, %v1323_v49  ;;  %v1998_v26 = vpop.eup %1997  ;;  %v1445_v29 = vand.u32 2147483647, %v1437_v6 }
 0x446   : > { %v1412_v38 = vpop.permute.xlu1 %1411  ;;  %v2000_v61 = vpop.eup %1999  ;;  %v1449_v30 = vand.u32 2147483647, %v1441_v14  ;;  %v1450_v31 = vand.u32 2147483647, %v1442_v51  ;;  %v1451_v33 = vmul.f32 10.0, %v1443_v12  ;;  %v1463_v49 = vmul.f32 %v1439_v17, %v1439_v17 }
 0x447   : > { %v1431_v42 = vmax.f32 %v1427_v25, 0.0  ;;  %v1428_v43 = vsub.f32 0.0, %v1424_v28  ;;  %v1421_v46 = vmul.f32 %v1412_v38, %v1327_v41  ;;  %v1452_v28 = vmul.f32 10.0, %v1444_v23 }
 0x448   : > { %v1387_v44 = vpop.permute.xlu0 %1386  ;;  %v1455_v38 = vmul.f32 10.0, %v1447_v52 }
 0x449   : > { %v1432_v60 = vmax.f32 %v1428_v43, 0.0  ;;  %1502 = vrot.lane.b32.xlu1 %v1431_v42, %s2240_s8  ;;  %v1395_v18 = vmul.f32 %v1387_v44, %v1324_v39  ;;  %v1425_v47 = vsub.f32 %v1394_v7, %v1421_v46  ;;  %v1456_v42 = vmul.f32 10.0, %v1448_v3 }
 0x44a   : > { %v1414_v40 = vpop.permute.xlu1 %1413  ;;  %v1460_v43 = vmul.f32 %v1436_v53, %v1436_v53  ;;  %v1464_v44 = vmul.f32 %v1440_v20, %v1440_v20  ;;  %v1453_v46 = vmul.f32 10.0, %v1445_v29  ;;  %v1466_v20 = vmul.f32 %v1442_v51, %v1442_v51 }
 0x44b   : > { %v1422_v8 = vmul.f32 %v1414_v40, %v1328_v45  ;;  %1504 = vrot.lane.b32.xlu0 %v1432_v60, %s2240_s8  ;;  %v1429_v56 = vsub.f32 0.0, %v1425_v47 }
 0x44c   : > { %v1102_v9 = vpop.permute.xlu0 %1101 }
 0x44d   : > { %v1426_v55 = vsub.f32 %v1395_v18, %v1422_v8  ;;  %1259 = vrot.lane.b32.xlu1 %v1998_v26, %s2236_s13  ;;  %v2002_v54 = vpop.eup %2001  ;;  %v1433_v11 = vmax.f32 %v1429_v56, 0.0  ;;  %v1113_v40 = vsub.f32 %v2720_v59, %v1102_v9  ;;  %v1457_v18 = vmul.f32 10.0, %v1449_v30 }
 0x44e   : > { %v2004_v57 = vpop.eup %2003  ;;  %v1104_v2 = vpop.permute.xlu1 %1103  ;;  %v1465_v8 = vmul.f32 %v1441_v14, %v1441_v14  ;;  %v1471_v56 = vadd.f32 %v1463_v49, %v1455_v38  ;;  %v1454_v9 = vmul.f32 10.0, %v1446_v50 }
 0x44f   : > { %v1430_v48 = vsub.f32 0.0, %v1426_v55  ;;  %1257 = vrot.lane.b32.xlu0 %v2000_v61, %s2236_s13  ;;  %v1114_v39 = vsub.f32 %v2731_v0, %v1104_v2  ;;  %v1472_v0 = vadd.f32 %v1464_v44, %v1456_v42 }
 0x450   : > { %v1118_v10 = vpop.permute.xlu0 %1117 }
 0x451   : > { %1263 = vrot.lane.b32.xlu1 %v2002_v54, %s2236_s13  ;;  %v1434_v62 = vmax.f32 %v1430_v48, 0.0  ;;  %v1129_v45 = vmul.f32 %v1118_v10, %v2718_v58  ;;  %v1467_v48 = vadd.f32 %v1459_v34, %v1451_v33  ;;  %v1468_v54 = vadd.f32 %v1460_v43, %v1452_v28 }
 0x452   : > { %v1120_v4 = vpop.permute.xlu1 %1119  ;;  %v1462_v10 = vmul.f32 %v1438_v22, %v1438_v22 }
 0x453   : > { %1261 = vrot.lane.b32.xlu0 %v2004_v57, %s2236_s13  ;;  %v1130_v35 = vmul.f32 %v1120_v4, %v2729_v63  ;;  %v1133_v57 = vsub.f32 %v1113_v40, %v1129_v45  ;;  %v1458_v4 = vmul.f32 10.0, %v1450_v31  ;;  %v1476_v23 = vadd.f32 %v1472_v0, %v1468_v54 }
 0x454   : > { %v1142_v1 = vpop.permute.xlu0 %1141 }
 0x455   : > { %1508 = vrot.lane.b32.xlu1 %v1434_v62, %s2240_s8  ;;  %v1153_v25 = vmul.f32 %v1142_v1, %v2718_v58  ;;  %v1134_v26 = vsub.f32 %v1114_v39, %v1130_v35  ;;  %v1474_v29 = vadd.f32 %v1466_v20, %v1458_v4  ;;  %v1535_v51 = vsel %vm578_vm0, %v1476_v23, 0.0 }
 0x456   : > { %v1144_v13 = vpop.permute.xlu1 %1143 }
 0x457   : > { %1506 = vrot.lane.b32.xlu0 %v1433_v11, %s2240_s8  ;;  %v1154_v5 = vmul.f32 %v1144_v13, %v2729_v63  ;;  %v1461_v63 = vmul.f32 %v1437_v6, %v1437_v6  ;;  %v1157_v47 = vmul.f32 441.0, %v1153_v25 }
 0x458   : > { %v2900_v15 = vpop.permute.xlu0 %1105 }
 0x459   : > { %v1158_v60 = vmul.f32 441.0, %v1154_v5  ;;  %v1115_v11 = vsub.f32 %v2765_v27, %v2900_v15  ;;  %v1161_v53 = vadd.f32 %v1157_v47, %v1133_v57  ;;  %v1469_v6 = vadd.f32 %v1461_v63, %v1453_v46 }
 0x45a   : > { %v1122_v32 = vpop.permute.xlu1 %1121  ;;  %v1470_v5 = vadd.f32 %v1462_v10, %v1454_v9 }
 0x45b   : > { %v1131_v58 = vmul.f32 %v1122_v32, %v2763_v19  ;;  %v1162_v59 = vadd.f32 %v1158_v60, %v1134_v26  ;;  %v1475_v32 = vadd.f32 %v1471_v56, %v1467_v48  ;;  %v1221_v52 = vmul.f32 %v1161_v53, %v1161_v53 }
 0x45c   : > { %v1146_v24 = vpop.permute.xlu0 %1145  ;;  %v1478_v38 = vadd.f32 %v1474_v29, %v1470_v5 }
 0x45d   : > { %v1155_v55 = vmul.f32 %v1146_v24, %v2763_v19  ;;  %v1473_v19 = vadd.f32 %v1465_v8, %v1457_v18  ;;  %v1222_v12 = vmul.f32 %v1162_v59, %v1162_v59  ;;  %v1534_v30 = vsel %vm578_vm0, %v1475_v32, 0.0 }
 0x45e   : > { %v2903_v21 = vpop.permute.xlu1 %1107  ;;  %v1539_v26 = vsel %vm578_vm0, %v1478_v38, 0.0 }
 0x45f   : > { %v1159_v13 = vmul.f32 441.0, %v1155_v55  ;;  %v1116_v1 = vsub.f32 %v2777_v37, %v2903_v21  ;;  %v1477_v21 = vadd.f32 %v1473_v19, %v1469_v6 }
 0x460   : > { %v1124_v7 = vpop.permute.xlu0 %1123 }
 0x461   : > { %v1132_v62 = vmul.f32 %v1124_v7, %v2773_v36  ;;  %v1537_v44 = vsel %vm578_vm0, %v1477_v21, 0.0 }
 0x462   : > { %v1148_v41 = vpop.permute.xlu1 %1147 }
 0x463   : > { %v1156_v61 = vmul.f32 %v1148_v41, %v2773_v36  ;;  %v1135_v36 = vsub.f32 %v1115_v11, %v1131_v58  ;;  %v1136_v14 = vsub.f32 %v1116_v1, %v1132_v62  ;;  %v1536_v41 = vadd.f32 %v1535_v51, %v1534_v30 }
 0x465   : > { %v1160_v16 = vmul.f32 441.0, %v1156_v61  ;;  %v1163_v22 = vadd.f32 %v1159_v13, %v1135_v36  ;;  %v1538_v18 = vadd.f32 %v1537_v44, %v1536_v41 }
 0x467   : > { %v1164_v24 = vadd.f32 %v1160_v16, %v1136_v14  ;;  %v1223_v35 = vmul.f32 %v1163_v22, %v1163_v22  ;;  %v1540_v54 = vadd.f32 %v1539_v26, %v1538_v18 }
 0x469   : > { %v1224_v34 = vmul.f32 %v1164_v24, %v1164_v24 }
 0x4bb   : > { %v1503_v2 = vpop.permute.xlu1 %1502 }
 0x4bc   : > { %v1515_v39 = vsel %vm1514_vm5, %v1503_v2, 0.0 }
 0x4bd   : > { %v1505_v17 = vpop.permute.xlu0 %1504 }
 0x4be   : > { %v1516_v42 = vsel %vm1514_vm5, %v1505_v17, 0.0 }
 0x4bf   : > { %v1260_v27 = vpop.permute.xlu1 %1259  ;;  %v1517_v60 = vadd.f32 %v1516_v42, %v1515_v39 }
 0x4c0   : > { %v1270_v15 = vmul.f32 %v1260_v27, %v1222_v12 }
 0x4c1   : > { %v1258_v3 = vpop.permute.xlu0 %1257 }
 0x4c2   : > { %v1269_v37 = vmul.f32 %v1258_v3, %v1221_v52  ;;  %v1480_v31 = vsel %vm578_vm0, %v1270_v15, 0.0 }
 0x4c3   : > { %v1264_v50 = vpop.permute.xlu1 %1263 }
 0x4c4   : > { %v1479_v33 = vsel %vm578_vm0, %v1269_v37, 0.0  ;;  %v1272_v43 = vmul.f32 %v1264_v50, %v1224_v34 }
 0x4c5   : > { %v1481_v25 = vadd.f32 %v1480_v31, %v1479_v33  ;;  %v1262_v28 = vpop.permute.xlu0 %1261 }
 0x4c6   : > { %v1271_v49 = vmul.f32 %v1262_v28, %v1223_v35  ;;  %v1484_v8 = vsel %vm578_vm0, %v1272_v43, 0.0 }
 0x4c7   : > { %v1509_v46 = vpop.permute.xlu1 %1508 }
 0x4c8   : > { %v1482_v45 = vsel %vm578_vm0, %v1271_v49, 0.0  ;;  %v1521_v61 = vsel %vm1520_vm6, %v1509_v46, 0.0 }
 0x4c9   : > { %v1507_v40 = vpop.permute.xlu0 %1506  ;;  %v1483_v7 = vadd.f32 %v1482_v45, %v1481_v25 }
 0x4ca   : > { %v1518_v63 = vsel %vm1514_vm5, %v1507_v40, 0.0 }
 0x4cb   : > { %v1519_v47 = vadd.f32 %v1518_v63, %v1517_v60  ;;  %v1485_v55 = vadd.f32 %v1484_v8, %v1483_v7 }
 0x4cd   : > { %1486 = vadd.xlane.f32.xlu0 %v1485_v55  ;;  %v1522_v48 = vadd.f32 %v1521_v61, %v1519_v47 }
 0x4cf   : > { %1523 = vadd.xlane.f32.xlu1 %v1522_v48 }
 0x4d1   : > { %1541 = vadd.xlane.f32.xlu0 %v1540_v54 }
 0x55a   : > { %v1487_v56 = vpop.xlane.xlu0 %1486 }
 0x55b   : > { %v1488_v0 = vrot.slane %v1487_v56, 4 }
 0x55c   : > { %v1524_v57 = vpop.xlane.xlu1 %1523 }
 0x55d   : > { %v1489_v58 = vadd.f32 %v1488_v0, %v1487_v56  ;;  %v1525_v62 = vrot.slane %v1524_v57, 4 }
 0x55e   : > { %v1542_v59 = vpop.xlane.xlu0 %1541 }
 0x55f   : > { %v1490_v11 = vrot.slane %v1489_v58, 2  ;;  %v1526_v2 = vadd.f32 %v1525_v62, %v1524_v57  ;;  %v1543_v9 = vrot.slane %v1542_v59, 4 }
 0x561   : > { %v1527_v4 = vrot.slane %v1526_v2, 2  ;;  %v1491_v10 = vadd.f32 %v1490_v11, %v1489_v58  ;;  %v1544_v13 = vadd.f32 %v1543_v9, %v1542_v59 }
 0x563   : > { %v1528_v1 = vadd.f32 %v1527_v4, %v1526_v2  ;;  %v1492_v16 = vrot.slane %v1491_v10, 1  ;;  %v1545_v53 = vrot.slane %v1544_v13, 2 }
 0x565   : > { %v1493_v17 = vadd.f32 %v1492_v16, %v1491_v10  ;;  %v1529_v20 = vrot.slane %v1528_v1, 1  ;;  %v1546_v6 = vadd.f32 %v1545_v53, %v1544_v13 }
 0x567   : > { %1902 = vpush %v1493_v17  ;;  %v1530_v19 = vadd.f32 %v1529_v20, %v1528_v1  ;;  %v1547_v32 = vrot.slane %v1546_v6, 1 }
 0x569   : > { %1904 = vpush %v1530_v19  ;;  %v1548_v36 = vadd.f32 %v1547_v32, %v1546_v6 }
 0x56b   : > { %1906 = vpush %v1548_v36 }
 0x598   : > { %s1903_s21 = spop %1902 }
 0x599   : > { %v1495_v14 = vstv %s1903_s21 }
 0x59a   : > { %1497 = vst.msk [vmem:[%s470_s19] sm:$0x1] %vm1496_vm7, %v1495_v14  ;;  %s1905_s12 = spop %1904 }
 0x59b   : > { %v1532_v12 = vstv %s1905_s12 }
 0x59c   : > { %1533 = vst.msk [vmem:[%s473_s14] sm:$0x1] %vm1496_vm7, %v1532_v12  ;;  %s1907_s18 = spop %1906 }
 0x59d   : > { %v1550_v23 = vstv %s1907_s18 }
 0x59e   : > { %1551 = vst.msk [vmem:[%s476_s22] sm:$0x1] %vm1496_vm7, %v1550_v23 }
 0x59f PF: > { %s3011_s30 = sld [smem:[#allocation14_spill]]  ;;  %s3012_s16 = sld [smem:[#allocation13_spill]] }
 0x5a0   : > { %s3013_s29 = sld [smem:[#allocation15_spill]]  ;;  %s3014_s27 = smov %s2215_s28 }
 0x5a5   : > { %p18_p12 = scmp.ge.s32.totalorder %s3011_s30, 4   ;;  %s3015_s28 = smov %s3012_s16 }
 0x5a7   :  { %20 = sbr.rel (!%p18_p12) target bundleno = 9 (0x9), region = 148 }
 0x5ae   :  { %1593 = vsyncpa [#allocation3], 1 }
 0x5af   :  { %1595 = vsyncpa [#allocation3 + $0x1], 1 }
 0x5b0   :  { %1596 = vsyncpa [#allocation5], 1 }

</bundles_post_ra>
